<compile_context>
chip_gen: v5e
topology: v5e:2x2
jax: 0.10.0
libtpu: 0.0.40
codegen_flags: <defaults>
</compile_context>

<pallas_src>
import functools

import jax
import jax.numpy as jnp
from jax import lax
from jax.experimental import pallas as pl
from jax.experimental.pallas import tpu as pltpu


def _mod_const(x, m):
    """int32 vector remainder by a static constant (bitwise AND when m is 2^k)."""
    if m & (m - 1) == 0:
        return jnp.bitwise_and(x, m - 1)
    return lax.rem(x, jnp.int32(m))


# --------------------------------------------------------------------------- #
# Kernel
# --------------------------------------------------------------------------- #
def _down_block_kernel(x_ref, w1_ref, w2_ref, t1_ref, t2_ref, bands_ref, c2_ref,
                       *, height, width):
    """Fused downBlock forward (whole batch in one step).

    Layout: channel-major with batch folded on lanes, flat p = n*H*W + y*W + x.
      x_ref    : (Cin, L)      f32,  L = N*H*W
      w1_ref   : (OC, 9*Cin)   bf16, column k*Cin + c with tap k = ky*3 + kx
      w2_ref   : (OC, 9*OC)    bf16
      t1_ref   : (OC, 1)       f32   (already multiplied by thr)
      t2_ref   : (OC, 1)       f32
      bands_ref: (4*OC, L)     f32   full-res Haar bands [LL;HL;LH;HH] (decimated in wrapper)
      c2_ref   : (OC, L)       f32
    """
    h, w = height, width
    hw = h * w
    _, L = x_ref.shape
    oc = c2_ref.shape[0]

    # Per-image replicate-pad edge masks from a single iota (no mask input DMA).
    pos = lax.broadcasted_iota(jnp.int32, (1, L), 1)
    col = _mod_const(pos, w)          # x coordinate within a row
    pim = _mod_const(pos, hw)         # flat position within its image
    first_col = col == 0
    last_col = col == w - 1
    first_row = pim < w
    last_row = pim >= hw - w

    def conv3x3_threshold(v, w_all_ref, t_ref):
        # v: (Cin, L) f32.  Build 9 edge-clamped shifted copies (taps) of v via
        # XLU rolls + mask selects, stack on K, one MXU matmul, then threshold.
        rows = {}
        for dy in (-1, 0, 1):
            if dy == 0:
                rows[dy] = v
            else:
                rolled = pltpu.roll(v, (-dy * w) % L, axis=1)   # value at row y+dy
                rows[dy] = jnp.where(first_row if dy < 0 else last_row, v, rolled)
        taps = []
        for dy in (-1, 0, 1):                                   # tap k = (dy+1)*3 + (dx+1)
            ry = rows[dy]
            for dx in (-1, 0, 1):
                if dx == 0:
                    taps.append(ry)
                else:
                    rolled = pltpu.roll(ry, (-dx) % L, axis=1)  # value at col x+dx
                    taps.append(jnp.where(first_col if dx < 0 else last_col, ry, rolled))
        # NOTE: tap blocks of Cin rows; for Cin not a multiple of 8 Mosaic will
        # relayout the concat, but the stacked slab is tiny (9*Cin x L).
        xk = jnp.concatenate(taps, axis=0).astype(jnp.bfloat16)        # (9*Cin, L)
        y = jnp.dot(w_all_ref[...], xk, preferred_element_type=jnp.float32)  # (OC, L) f32
        t = t_ref[...]                                                  # (OC, 1)
        a = y - t
        b = -y - t
        # leaky_relu(a, 0.001) - leaky_relu(b, 0.01), in f32 on the VPU.
        return jnp.where(a >= 0.0, a, 0.001 * a) - jnp.where(b >= 0.0, b, 0.01 * b)

    x = x_ref[...]
    c1 = conv3x3_threshold(x, w1_ref, t1_ref)        # (OC, L), VMEM-resident
    c2 = conv3x3_threshold(c1, w2_ref, t2_ref)       # (OC, L)
    c2_ref[...] = c2

    # Haar bands via rolls (no dense DWT matrices).  For even (y, x):
    #   a = c2[y,x], b = c2[y+1,x], c = c2[y,x+1], d = c2[y+1,x+1]
    # Odd-position values are garbage and are dropped by the wrapper's stride-2 slice.
    a = c2
    b = pltpu.roll(c2, L - w, axis=1)
    c = pltpu.roll(c2, L - 1, axis=1)
    d = pltpu.roll(c2, L - w - 1, axis=1)
    bands_ref[0 * oc:1 * oc, :] = 0.5 * (a + b + c + d)     # LL
    bands_ref[1 * oc:2 * oc, :] = 0.5 * (c + d - a - b)     # HL
    bands_ref[2 * oc:3 * oc, :] = 0.5 * (b + d - a - c)     # LH
    bands_ref[3 * oc:4 * oc, :] = 0.5 * (a + d - b - c)     # HH


# --------------------------------------------------------------------------- #
# Wrapper
# --------------------------------------------------------------------------- #
def down_block(x_nchw, thr, w1_oihw, w2_oihw, t1, t2):
    """Equivalent of downBlock.forward(x, thr).  Returns (dwt(c2), c2), both NCHW."""
    n, pc, h, w = x_nchw.shape
    oc = w1_oihw.shape[0]
    assert w1_oihw.shape == (oc, pc, 3, 3) and w2_oihw.shape == (oc, oc, 3, 3)
    assert h % 2 == 0 and w % 2 == 0 and w >= 2
    hw = h * w
    L = n * hw

    # One-time layout plumbing in the wrapper (batch folded onto the lane axis).
    x_flat = jnp.transpose(x_nchw, (1, 0, 2, 3)).reshape(pc, L).astype(jnp.float32)
    # Weight column (ky*3 + kx)*Cin + c  <-  w[o, c, ky, kx]
    w1_all = jnp.transpose(w1_oihw, (0, 2, 3, 1)).reshape(oc, 9 * pc).astype(jnp.bfloat16)
    w2_all = jnp.transpose(w2_oihw, (0, 2, 3, 1)).reshape(oc, 9 * oc).astype(jnp.bfloat16)
    t1s = (jnp.reshape(t1, (oc,)) * thr).reshape(oc, 1).astype(jnp.float32)
    t2s = (jnp.reshape(t2, (oc,)) * thr).reshape(oc, 1).astype(jnp.float32)

    kernel = functools.partial(_down_block_kernel, height=h, width=w)
    bands_full, c2_flat = pl.pallas_call(
        kernel,
        out_shape=(
            jax.ShapeDtypeStruct((4 * oc, L), jnp.float32),
            jax.ShapeDtypeStruct((oc, L), jnp.float32),
        ),
        grid=(1,),   # whole batch in one step; block the lane axis by whole images for large N*HW
        in_specs=[
            pl.BlockSpec((pc, L), lambda i: (0, 0)),
            pl.BlockSpec((oc, 9 * pc), lambda i: (0, 0)),
            pl.BlockSpec((oc, 9 * oc), lambda i: (0, 0)),
            pl.BlockSpec((oc, 1), lambda i: (0, 0)),
            pl.BlockSpec((oc, 1), lambda i: (0, 0)),
        ],
        out_specs=(
            pl.BlockSpec((4 * oc, L), lambda i: (0, 0)),
            pl.BlockSpec((oc, L), lambda i: (0, 0)),
        ),
        compiler_params=pltpu.CompilerParams(dimension_semantics=("arbitrary",)),
    )(x_flat, w1_all, w2_all, t1s, t2s)

    # Wrapper-side relayout: stride-2 decimation of the full-res bands + NCHW transposes.
    c2 = c2_flat.reshape(oc, n, h, w).transpose(1, 0, 2, 3)
    dwt = (bands_full.reshape(4, oc, n, h, w)[:, :, :, 0::2, 0::2]
           .transpose(2, 0, 1, 3, 4).reshape(n, 4 * oc, h // 2, w // 2))
    return dwt, c2


# --------------------------------------------------------------------------- #
# Pure-JAX reference (for correctness check)
# --------------------------------------------------------------------------- #
def _ref_conv_thresh(x, w_oihw, t, thr):
    xp = jnp.pad(x, ((0, 0), (0, 0), (1, 1), (1, 1)), mode="edge")
    y = jax.lax.conv_general_dilated(
        xp, w_oihw, window_strides=(1, 1), padding="VALID",
        dimension_numbers=("NCHW", "OIHW", "NCHW"),
        precision=jax.lax.Precision.HIGHEST)
    ts = jnp.reshape(t, (1, -1, 1, 1)) * thr
    a = y - ts
    b = -y - ts
    return jnp.where(a >= 0, a, 0.001 * a) - jnp.where(b >= 0, b, 0.01 * b)


def _ref_dwt_haar(x):
    # TODO(synk): dwtHaar_2d source was not provided with the spec; the standard
    # Haar decomposition (MWCNN dwt_init: /2 normalization, cat(LL,HL,LH,HH) on
    # channels) is assumed here and in the kernel.
    x01 = x[:, :, 0::2, :] / 2
    x02 = x[:, :, 1::2, :] / 2
    x1 = x01[:, :, :, 0::2]
    x2 = x02[:, :, :, 0::2]
    x3 = x01[:, :, :, 1::2]
    x4 = x02[:, :, :, 1::2]
    ll = x1 + x2 + x3 + x4
    hl = -x1 - x2 + x3 + x4
    lh = -x1 + x2 - x3 + x4
    hh = x1 - x2 - x3 + x4
    return jnp.concatenate([ll, hl, lh, hh], axis=1)


def _ref_down_block(x, thr, w1, w2, t1, t2):
    c1 = _ref_conv_thresh(x, w1, t1, thr)
    c2 = _ref_conv_thresh(c1, w2, t2, thr)
    return _ref_dwt_haar(c2), c2


# --------------------------------------------------------------------------- #
if __name__ == "__main__":
    N, PC, OC, H, W = 2, 4, 8, 16, 16
    thr = 0.1

    key = jax.random.PRNGKey(0)
    kx, k1, k2, kt1, kt2 = jax.random.split(key, 5)

    x = jax.random.normal(kx, (N, PC, H, W), dtype=jnp.float32)           # NCHW
    # Conv weights in PyTorch OIHW layout: c1 (OC, PC, 3, 3), c2 (OC, OC, 3, 3)
    w1 = 0.2 * jax.random.normal(k1, (OC, PC, 3, 3), dtype=jnp.float32)
    w2 = 0.2 * jax.random.normal(k2, (OC, OC, 3, 3), dtype=jnp.float32)
    # Threshold params, PyTorch shape (nts, 1, 1) (init is zeros; use small random)
    t1 = 0.1 * jax.random.normal(kt1, (OC, 1, 1), dtype=jnp.float32)
    t2 = 0.1 * jax.random.normal(kt2, (OC, 1, 1), dtype=jnp.float32)

    dwt_out, c2_out = down_block(x, thr, w1, w2, t1, t2)
    dwt_out = jax.block_until_ready(dwt_out)
    c2_out = jax.block_until_ready(c2_out)

    dwt_ref, c2_ref = _ref_down_block(x, thr, w1, w2, t1, t2)
    assert c2_out.shape == (N, OC, H, W)
    assert dwt_out.shape == (N, 4 * OC, H // 2, W // 2)
    # Kernel feeds the MXU with bf16 inputs (f32 accumulation); reference runs in
    # f32 HIGHEST, so tolerances are sized for bf16 input rounding across two convs.
    assert jnp.allclose(c2_out, c2_ref, atol=1e-1, rtol=5e-2), "c2 mismatch vs reference"
    assert jnp.allclose(dwt_out, dwt_ref, atol=1e-1, rtol=5e-2), "dwt mismatch vs reference"

    print("KERNEL_OK")
</pallas_src>

<mosaic_0001>
module attributes {stable_mosaic.version = 11 : i64} {
  func.func @_down_block_kernel(%arg0: i32, %arg1: memref<4x512xf32, #tpu.memory_space<vmem>>, %arg2: memref<8x36xbf16, #tpu.memory_space<vmem>>, %arg3: memref<8x72xbf16, #tpu.memory_space<vmem>>, %arg4: memref<8x1xf32, #tpu.memory_space<vmem>>, %arg5: memref<8x1xf32, #tpu.memory_space<vmem>>, %arg6: memref<32x512xf32, #tpu.memory_space<vmem>>, %arg7: memref<8x512xf32, #tpu.memory_space<vmem>>) attributes {dimension_semantics = [#tpu.dimension_semantics<arbitrary>], iteration_bounds = array<i64: 1>, scalar_prefetch = 0 : i64, scratch_operands = 0 : i64, tpu.core_type = #tpu.core_type<tc>, window_params = [{pipeline_mode = #tpu.pipeline_mode<synchronous>, transform_indices = @transform_0, window_bounds = array<i64: 4, 512>}, {pipeline_mode = #tpu.pipeline_mode<synchronous>, transform_indices = @transform_1, window_bounds = array<i64: 8, 36>}, {pipeline_mode = #tpu.pipeline_mode<synchronous>, transform_indices = @transform_2, window_bounds = array<i64: 8, 72>}, {pipeline_mode = #tpu.pipeline_mode<synchronous>, transform_indices = @transform_3, window_bounds = array<i64: 8, 1>}, {pipeline_mode = #tpu.pipeline_mode<synchronous>, transform_indices = @transform_4, window_bounds = array<i64: 8, 1>}, {pipeline_mode = #tpu.pipeline_mode<synchronous>, transform_indices = @transform_5, window_bounds = array<i64: 32, 512>}, {pipeline_mode = #tpu.pipeline_mode<synchronous>, transform_indices = @transform_6, window_bounds = array<i64: 8, 512>}]} {
    %0 = tpu.iota {dimensions = array<i32: 1>} : vector<1x512xi32>
    %c15_i32 = arith.constant 15 : i32
    %1 = vector.broadcast %c15_i32 : i32 to vector<1x512xi32>
    %2 = arith.andi %0, %1 : vector<1x512xi32>
    %c255_i32 = arith.constant 255 : i32
    %3 = vector.broadcast %c255_i32 : i32 to vector<1x512xi32>
    %4 = arith.andi %0, %3 : vector<1x512xi32>
    %c0_i32 = arith.constant 0 : i32
    %5 = vector.broadcast %c0_i32 : i32 to vector<1x512xi32>
    %6 = arith.cmpi eq, %2, %5 : vector<1x512xi32>
    %c15_i32_0 = arith.constant 15 : i32
    %7 = vector.broadcast %c15_i32_0 : i32 to vector<1x512xi32>
    %8 = arith.cmpi eq, %2, %7 : vector<1x512xi32>
    %c16_i32 = arith.constant 16 : i32
    %9 = vector.broadcast %c16_i32 : i32 to vector<1x512xi32>
    %10 = arith.cmpi slt, %4, %9 : vector<1x512xi32>
    %c240_i32 = arith.constant 240 : i32
    %11 = vector.broadcast %c240_i32 : i32 to vector<1x512xi32>
    %12 = arith.cmpi sge, %4, %11 : vector<1x512xi32>
    %c0 = arith.constant 0 : index
    %c0_1 = arith.constant 0 : index
    %13 = vector.load %arg1[%c0, %c0_1] : memref<4x512xf32, #tpu.memory_space<vmem>>, vector<4x512xf32>
    %c16_i32_2 = arith.constant 16 : i32
    %14 = tpu.dynamic_rotate %13 by %c16_i32_2 dim 1 : vector<4x512xf32>, i32 -> vector<4x512xf32>
    %15 = vector.shape_cast %10 : vector<1x512xi1> to vector<1x512xi1>
    %16 = vector.broadcast %15 : vector<1x512xi1> to vector<4x512xi1>
    %17 = arith.select %16, %13, %14 : vector<4x512xi1>, vector<4x512xf32>
    %c496_i32 = arith.constant 496 : i32
    %18 = tpu.dynamic_rotate %13 by %c496_i32 dim 1 : vector<4x512xf32>, i32 -> vector<4x512xf32>
    %19 = vector.shape_cast %12 : vector<1x512xi1> to vector<1x512xi1>
    %20 = vector.broadcast %19 : vector<1x512xi1> to vector<4x512xi1>
    %21 = arith.select %20, %13, %18 : vector<4x512xi1>, vector<4x512xf32>
    %c1_i32 = arith.constant 1 : i32
    %22 = tpu.dynamic_rotate %17 by %c1_i32 dim 1 : vector<4x512xf32>, i32 -> vector<4x512xf32>
    %23 = vector.shape_cast %6 : vector<1x512xi1> to vector<1x512xi1>
    %24 = vector.broadcast %23 : vector<1x512xi1> to vector<4x512xi1>
    %25 = arith.select %24, %17, %22 : vector<4x512xi1>, vector<4x512xf32>
    %c511_i32 = arith.constant 511 : i32
    %26 = tpu.dynamic_rotate %17 by %c511_i32 dim 1 : vector<4x512xf32>, i32 -> vector<4x512xf32>
    %27 = vector.shape_cast %8 : vector<1x512xi1> to vector<1x512xi1>
    %28 = vector.broadcast %27 : vector<1x512xi1> to vector<4x512xi1>
    %29 = arith.select %28, %17, %26 : vector<4x512xi1>, vector<4x512xf32>
    %c1_i32_3 = arith.constant 1 : i32
    %30 = tpu.dynamic_rotate %13 by %c1_i32_3 dim 1 : vector<4x512xf32>, i32 -> vector<4x512xf32>
    %31 = vector.shape_cast %6 : vector<1x512xi1> to vector<1x512xi1>
    %32 = vector.broadcast %31 : vector<1x512xi1> to vector<4x512xi1>
    %33 = arith.select %32, %13, %30 : vector<4x512xi1>, vector<4x512xf32>
    %c511_i32_4 = arith.constant 511 : i32
    %34 = tpu.dynamic_rotate %13 by %c511_i32_4 dim 1 : vector<4x512xf32>, i32 -> vector<4x512xf32>
    %35 = vector.shape_cast %8 : vector<1x512xi1> to vector<1x512xi1>
    %36 = vector.broadcast %35 : vector<1x512xi1> to vector<4x512xi1>
    %37 = arith.select %36, %13, %34 : vector<4x512xi1>, vector<4x512xf32>
    %c1_i32_5 = arith.constant 1 : i32
    %38 = tpu.dynamic_rotate %21 by %c1_i32_5 dim 1 : vector<4x512xf32>, i32 -> vector<4x512xf32>
    %39 = vector.shape_cast %6 : vector<1x512xi1> to vector<1x512xi1>
    %40 = vector.broadcast %39 : vector<1x512xi1> to vector<4x512xi1>
    %41 = arith.select %40, %21, %38 : vector<4x512xi1>, vector<4x512xf32>
    %c511_i32_6 = arith.constant 511 : i32
    %42 = tpu.dynamic_rotate %21 by %c511_i32_6 dim 1 : vector<4x512xf32>, i32 -> vector<4x512xf32>
    %43 = vector.shape_cast %8 : vector<1x512xi1> to vector<1x512xi1>
    %44 = vector.broadcast %43 : vector<1x512xi1> to vector<4x512xi1>
    %45 = arith.select %44, %21, %42 : vector<4x512xi1>, vector<4x512xf32>
    %46 = tpu.concatenate %25, %17, %29, %33, %13, %37, %41, %21, %45 in 0 : vector<4x512xf32>, vector<4x512xf32>, vector<4x512xf32>, vector<4x512xf32>, vector<4x512xf32>, vector<4x512xf32>, vector<4x512xf32>, vector<4x512xf32>, vector<4x512xf32> -> vector<36x512xf32>
    %47 = arith.truncf %46 : vector<36x512xf32> to vector<36x512xbf16>
    %c0_7 = arith.constant 0 : index
    %c0_8 = arith.constant 0 : index
    %48 = vector.load %arg2[%c0_7, %c0_8] : memref<8x36xbf16, #tpu.memory_space<vmem>>, vector<8x36xbf16>
    %cst = arith.constant dense<0.000000e+00> : vector<8x512xf32>
    %49 = tpu.matmul %48, %47, %cst {dimension_numbers = #tpu.dot_dimension_numbers<[1], [0], [0], [1], [0, 0, 1, 1], [], []>} : vector<8x36xbf16>, vector<36x512xbf16>, vector<8x512xf32> -> vector<8x512xf32>
    %c0_9 = arith.constant 0 : index
    %c0_10 = arith.constant 0 : index
    %50 = vector.load %arg4[%c0_9, %c0_10] : memref<8x1xf32, #tpu.memory_space<vmem>>, vector<8x1xf32>
    %51 = vector.broadcast %50 : vector<8x1xf32> to vector<8x512xf32>
    %52 = arith.subf %49, %51 : vector<8x512xf32>
    %cst_11 = arith.constant 0.000000e+00 : f32
    %53 = vector.broadcast %cst_11 : f32 to vector<8x512xf32>
    %54 = arith.subf %53, %49 : vector<8x512xf32>
    %55 = vector.broadcast %50 : vector<8x1xf32> to vector<8x512xf32>
    %56 = arith.subf %54, %55 : vector<8x512xf32>
    %cst_12 = arith.constant 0.000000e+00 : f32
    %57 = vector.broadcast %cst_12 : f32 to vector<8x512xf32>
    %58 = arith.cmpf oge, %52, %57 : vector<8x512xf32>
    %cst_13 = arith.constant 1.000000e-03 : f32
    %59 = vector.broadcast %cst_13 : f32 to vector<8x512xf32>
    %60 = arith.mulf %59, %52 : vector<8x512xf32>
    %61 = arith.select %58, %52, %60 : vector<8x512xi1>, vector<8x512xf32>
    %cst_14 = arith.constant 0.000000e+00 : f32
    %62 = vector.broadcast %cst_14 : f32 to vector<8x512xf32>
    %63 = arith.cmpf oge, %56, %62 : vector<8x512xf32>
    %cst_15 = arith.constant 0.00999999977 : f32
    %64 = vector.broadcast %cst_15 : f32 to vector<8x512xf32>
    %65 = arith.mulf %64, %56 : vector<8x512xf32>
    %66 = arith.select %63, %56, %65 : vector<8x512xi1>, vector<8x512xf32>
    %67 = arith.subf %61, %66 : vector<8x512xf32>
    %c16_i32_16 = arith.constant 16 : i32
    %68 = tpu.dynamic_rotate %67 by %c16_i32_16 dim 1 : vector<8x512xf32>, i32 -> vector<8x512xf32>
    %69 = vector.shape_cast %10 : vector<1x512xi1> to vector<1x512xi1>
    %70 = vector.broadcast %69 : vector<1x512xi1> to vector<8x512xi1>
    %71 = arith.select %70, %67, %68 : vector<8x512xi1>, vector<8x512xf32>
    %c496_i32_17 = arith.constant 496 : i32
    %72 = tpu.dynamic_rotate %67 by %c496_i32_17 dim 1 : vector<8x512xf32>, i32 -> vector<8x512xf32>
    %73 = vector.shape_cast %12 : vector<1x512xi1> to vector<1x512xi1>
    %74 = vector.broadcast %73 : vector<1x512xi1> to vector<8x512xi1>
    %75 = arith.select %74, %67, %72 : vector<8x512xi1>, vector<8x512xf32>
    %c1_i32_18 = arith.constant 1 : i32
    %76 = tpu.dynamic_rotate %71 by %c1_i32_18 dim 1 : vector<8x512xf32>, i32 -> vector<8x512xf32>
    %77 = vector.shape_cast %6 : vector<1x512xi1> to vector<1x512xi1>
    %78 = vector.broadcast %77 : vector<1x512xi1> to vector<8x512xi1>
    %79 = arith.select %78, %71, %76 : vector<8x512xi1>, vector<8x512xf32>
    %c511_i32_19 = arith.constant 511 : i32
    %80 = tpu.dynamic_rotate %71 by %c511_i32_19 dim 1 : vector<8x512xf32>, i32 -> vector<8x512xf32>
    %81 = vector.shape_cast %8 : vector<1x512xi1> to vector<1x512xi1>
    %82 = vector.broadcast %81 : vector<1x512xi1> to vector<8x512xi1>
    %83 = arith.select %82, %71, %80 : vector<8x512xi1>, vector<8x512xf32>
    %c1_i32_20 = arith.constant 1 : i32
    %84 = tpu.dynamic_rotate %67 by %c1_i32_20 dim 1 : vector<8x512xf32>, i32 -> vector<8x512xf32>
    %85 = vector.shape_cast %6 : vector<1x512xi1> to vector<1x512xi1>
    %86 = vector.broadcast %85 : vector<1x512xi1> to vector<8x512xi1>
    %87 = arith.select %86, %67, %84 : vector<8x512xi1>, vector<8x512xf32>
    %c511_i32_21 = arith.constant 511 : i32
    %88 = tpu.dynamic_rotate %67 by %c511_i32_21 dim 1 : vector<8x512xf32>, i32 -> vector<8x512xf32>
    %89 = vector.shape_cast %8 : vector<1x512xi1> to vector<1x512xi1>
    %90 = vector.broadcast %89 : vector<1x512xi1> to vector<8x512xi1>
    %91 = arith.select %90, %67, %88 : vector<8x512xi1>, vector<8x512xf32>
    %c1_i32_22 = arith.constant 1 : i32
    %92 = tpu.dynamic_rotate %75 by %c1_i32_22 dim 1 : vector<8x512xf32>, i32 -> vector<8x512xf32>
    %93 = vector.shape_cast %6 : vector<1x512xi1> to vector<1x512xi1>
    %94 = vector.broadcast %93 : vector<1x512xi1> to vector<8x512xi1>
    %95 = arith.select %94, %75, %92 : vector<8x512xi1>, vector<8x512xf32>
    %c511_i32_23 = arith.constant 511 : i32
    %96 = tpu.dynamic_rotate %75 by %c511_i32_23 dim 1 : vector<8x512xf32>, i32 -> vector<8x512xf32>
    %97 = vector.shape_cast %8 : vector<1x512xi1> to vector<1x512xi1>
    %98 = vector.broadcast %97 : vector<1x512xi1> to vector<8x512xi1>
    %99 = arith.select %98, %75, %96 : vector<8x512xi1>, vector<8x512xf32>
    %100 = tpu.concatenate %79, %71, %83, %87, %67, %91, %95, %75, %99 in 0 : vector<8x512xf32>, vector<8x512xf32>, vector<8x512xf32>, vector<8x512xf32>, vector<8x512xf32>, vector<8x512xf32>, vector<8x512xf32>, vector<8x512xf32>, vector<8x512xf32> -> vector<72x512xf32>
    %101 = arith.truncf %100 : vector<72x512xf32> to vector<72x512xbf16>
    %c0_24 = arith.constant 0 : index
    %c0_25 = arith.constant 0 : index
    %102 = vector.load %arg3[%c0_24, %c0_25] : memref<8x72xbf16, #tpu.memory_space<vmem>>, vector<8x72xbf16>
    %cst_26 = arith.constant dense<0.000000e+00> : vector<8x512xf32>
    %103 = tpu.matmul %102, %101, %cst_26 {dimension_numbers = #tpu.dot_dimension_numbers<[1], [0], [0], [1], [0, 0, 1, 1], [], []>} : vector<8x72xbf16>, vector<72x512xbf16>, vector<8x512xf32> -> vector<8x512xf32>
    %c0_27 = arith.constant 0 : index
    %c0_28 = arith.constant 0 : index
    %104 = vector.load %arg5[%c0_27, %c0_28] : memref<8x1xf32, #tpu.memory_space<vmem>>, vector<8x1xf32>
    %105 = vector.broadcast %104 : vector<8x1xf32> to vector<8x512xf32>
    %106 = arith.subf %103, %105 : vector<8x512xf32>
    %cst_29 = arith.constant 0.000000e+00 : f32
    %107 = vector.broadcast %cst_29 : f32 to vector<8x512xf32>
    %108 = arith.subf %107, %103 : vector<8x512xf32>
    %109 = vector.broadcast %104 : vector<8x1xf32> to vector<8x512xf32>
    %110 = arith.subf %108, %109 : vector<8x512xf32>
    %cst_30 = arith.constant 0.000000e+00 : f32
    %111 = vector.broadcast %cst_30 : f32 to vector<8x512xf32>
    %112 = arith.cmpf oge, %106, %111 : vector<8x512xf32>
    %cst_31 = arith.constant 1.000000e-03 : f32
    %113 = vector.broadcast %cst_31 : f32 to vector<8x512xf32>
    %114 = arith.mulf %113, %106 : vector<8x512xf32>
    %115 = arith.select %112, %106, %114 : vector<8x512xi1>, vector<8x512xf32>
    %cst_32 = arith.constant 0.000000e+00 : f32
    %116 = vector.broadcast %cst_32 : f32 to vector<8x512xf32>
    %117 = arith.cmpf oge, %110, %116 : vector<8x512xf32>
    %cst_33 = arith.constant 0.00999999977 : f32
    %118 = vector.broadcast %cst_33 : f32 to vector<8x512xf32>
    %119 = arith.mulf %118, %110 : vector<8x512xf32>
    %120 = arith.select %117, %110, %119 : vector<8x512xi1>, vector<8x512xf32>
    %121 = arith.subf %115, %120 : vector<8x512xf32>
    %c0_34 = arith.constant 0 : index
    %c0_35 = arith.constant 0 : index
    %122 = vector.load %arg7[%c0_34, %c0_35] : memref<8x512xf32, #tpu.memory_space<vmem>>, vector<8x512xf32>
    tpu.vector_store %arg7[%c0_34, %c0_35], %121 {strides = array<i32>} : memref<8x512xf32, #tpu.memory_space<vmem>>, vector<8x512xf32>,
    %c496_i32_36 = arith.constant 496 : i32
    %123 = tpu.dynamic_rotate %121 by %c496_i32_36 dim 1 : vector<8x512xf32>, i32 -> vector<8x512xf32>
    %c511_i32_37 = arith.constant 511 : i32
    %124 = tpu.dynamic_rotate %121 by %c511_i32_37 dim 1 : vector<8x512xf32>, i32 -> vector<8x512xf32>
    %c495_i32 = arith.constant 495 : i32
    %125 = tpu.dynamic_rotate %121 by %c495_i32 dim 1 : vector<8x512xf32>, i32 -> vector<8x512xf32>
    %126 = arith.addf %121, %123 : vector<8x512xf32>
    %127 = arith.addf %126, %124 : vector<8x512xf32>
    %128 = arith.addf %127, %125 : vector<8x512xf32>
    %cst_38 = arith.constant 5.000000e-01 : f32
    %129 = vector.broadcast %cst_38 : f32 to vector<8x512xf32>
    %130 = arith.mulf %129, %128 : vector<8x512xf32>
    %c0_39 = arith.constant 0 : index
    %c0_40 = arith.constant 0 : index
    %131 = vector.load %arg6[%c0_39, %c0_40] : memref<32x512xf32, #tpu.memory_space<vmem>>, vector<8x512xf32>
    tpu.vector_store %arg6[%c0_39, %c0_40], %130 {strides = array<i32>} : memref<32x512xf32, #tpu.memory_space<vmem>>, vector<8x512xf32>,
    %132 = arith.addf %124, %125 : vector<8x512xf32>
    %133 = arith.subf %132, %121 : vector<8x512xf32>
    %134 = arith.subf %133, %123 : vector<8x512xf32>
    %cst_41 = arith.constant 5.000000e-01 : f32
    %135 = vector.broadcast %cst_41 : f32 to vector<8x512xf32>
    %136 = arith.mulf %135, %134 : vector<8x512xf32>
    %c8 = arith.constant 8 : index
    %c0_42 = arith.constant 0 : index
    %137 = vector.load %arg6[%c8, %c0_42] : memref<32x512xf32, #tpu.memory_space<vmem>>, vector<8x512xf32>
    tpu.vector_store %arg6[%c8, %c0_42], %136 {strides = array<i32>} : memref<32x512xf32, #tpu.memory_space<vmem>>, vector<8x512xf32>,
    %138 = arith.addf %123, %125 : vector<8x512xf32>
    %139 = arith.subf %138, %121 : vector<8x512xf32>
    %140 = arith.subf %139, %124 : vector<8x512xf32>
    %cst_43 = arith.constant 5.000000e-01 : f32
    %141 = vector.broadcast %cst_43 : f32 to vector<8x512xf32>
    %142 = arith.mulf %141, %140 : vector<8x512xf32>
    %c16 = arith.constant 16 : index
    %c0_44 = arith.constant 0 : index
    %143 = vector.load %arg6[%c16, %c0_44] : memref<32x512xf32, #tpu.memory_space<vmem>>, vector<8x512xf32>
    tpu.vector_store %arg6[%c16, %c0_44], %142 {strides = array<i32>} : memref<32x512xf32, #tpu.memory_space<vmem>>, vector<8x512xf32>,
    %144 = arith.addf %121, %125 : vector<8x512xf32>
    %145 = arith.subf %144, %123 : vector<8x512xf32>
    %146 = arith.subf %145, %124 : vector<8x512xf32>
    %cst_45 = arith.constant 5.000000e-01 : f32
    %147 = vector.broadcast %cst_45 : f32 to vector<8x512xf32>
    %148 = arith.mulf %147, %146 : vector<8x512xf32>
    %c24 = arith.constant 24 : index
    %c0_46 = arith.constant 0 : index
    %149 = vector.load %arg6[%c24, %c0_46] : memref<32x512xf32, #tpu.memory_space<vmem>>, vector<8x512xf32>
    tpu.vector_store %arg6[%c24, %c0_46], %148 {strides = array<i32>} : memref<32x512xf32, #tpu.memory_space<vmem>>, vector<8x512xf32>,
    return
  }
  func.func @transform_0(%arg0: i32) -> (i32, i32) {
    %c0_i32 = arith.constant 0 : i32
    %c0_i32_0 = arith.constant 0 : i32
    %c0_i32_1 = arith.constant 0 : i32
    return %c0_i32, %c0_i32_0 : i32, i32
  }
  func.func @transform_1(%arg0: i32) -> (i32, i32) {
    %c0_i32 = arith.constant 0 : i32
    %c0_i32_0 = arith.constant 0 : i32
    %c0_i32_1 = arith.constant 0 : i32
    return %c0_i32, %c0_i32_0 : i32, i32
  }
  func.func @transform_2(%arg0: i32) -> (i32, i32) {
    %c0_i32 = arith.constant 0 : i32
    %c0_i32_0 = arith.constant 0 : i32
    %c0_i32_1 = arith.constant 0 : i32
    return %c0_i32, %c0_i32_0 : i32, i32
  }
  func.func @transform_3(%arg0: i32) -> (i32, i32) {
    %c0_i32 = arith.constant 0 : i32
    %c0_i32_0 = arith.constant 0 : i32
    %c0_i32_1 = arith.constant 0 : i32
    return %c0_i32, %c0_i32_0 : i32, i32
  }
  func.func @transform_4(%arg0: i32) -> (i32, i32) {
    %c0_i32 = arith.constant 0 : i32
    %c0_i32_0 = arith.constant 0 : i32
    %c0_i32_1 = arith.constant 0 : i32
    return %c0_i32, %c0_i32_0 : i32, i32
  }
  func.func @transform_5(%arg0: i32) -> (i32, i32) {
    %c0_i32 = arith.constant 0 : i32
    %c0_i32_0 = arith.constant 0 : i32
    %c0_i32_1 = arith.constant 0 : i32
    return %c0_i32, %c0_i32_0 : i32, i32
  }
  func.func @transform_6(%arg0: i32) -> (i32, i32) {
    %c0_i32 = arith.constant 0 : i32
    %c0_i32_0 = arith.constant 0 : i32
    %c0_i32_1 = arith.constant 0 : i32
    return %c0_i32, %c0_i32_0 : i32, i32
  }
}

</mosaic_0001>

<bundles_post_ra>
// kernel: tpu_custom_call.1
= control target key start
LH: loop header
LB: loop body
LE: loop exit
PB: predicated region body
PF: predicated region fallthrough
CT: control target
= control target key end

     0   :  { %12 = vsyncpa [#allocation3], 0  ;;  %s2080_s0 = inlined_call_operand.vmem [shape: f32[4,512], index: 0, kind: input, shape index: {}]   ;;  %s2081_s1 = inlined_call_operand.hbm [shape: bf16[8,36], index: 1, kind: input, shape index: {}]   ;;  %s2082_s2 = inlined_call_operand.hbm [shape: bf16[8,72], index: 2, kind: input, shape index: {}]   ;;  %s2083_s3 = inlined_call_operand.vmem [shape: f32[8,1], index: 3, kind: input, shape index: {}]   ;;  %s2084_s4 = inlined_call_operand.vmem [shape: f32[8,1], index: 4, kind: input, shape index: {}]   ;;  %s2085_s5 = inlined_call_operand.hbm [shape: f32[32,512], index: 5, kind: output, shape index: {0}]   ;;  %s2086_s6 = inlined_call_operand.hbm [shape: f32[8,512], index: 6, kind: output, shape index: {1}]  }
   0x1   :  { %13 = vsyncpa [#allocation6], 0 }
   0x2   :  { %14 = vsyncpa [#allocation4], 0 }
   0x3   :  { %15 = vsyncpa [#allocation9], 0  ;;  %s23_s23 = sshll.u32 %s2081_s1, 4  ;;  %s1238_s24 = smov [#allocation2]   ;;  %s24_s23 = int_to_ptr.hbm [resolvable:$true] %s23_s23 }
   0x4   :  { %s25_s25 = sshll.u32 %s1238_s24, 4  ;;  %s34_s28 = sshll.u32 %s2082_s2, 4  ;;  %s26_s25 = int_to_ptr.vmem [resolvable:$true] %s25_s25  ;;  %s35_s28 = int_to_ptr.hbm [resolvable:$true] %s34_s28 }
   0x5   :  { %28 = dma.hbm_to_vmem [thread:$0]  %s24_s23, 64, %s26_s25, [#allocation3]  }
   0x6   :  { %s1239_s29 = smov [#allocation5]  }
   0x7   :  { %s36_s30 = sshll.u32 %s1239_s29, 4  ;;  %s37_s30 = int_to_ptr.vmem [resolvable:$true] %s36_s30 }
   0x8   :  { %39 = dma.hbm_to_vmem [thread:$0]  %s35_s28, 64, %s37_s30, [#allocation6]  }
   0x9   :  { %1230 = dma.done.wait [#allocation3], 64  }
   0xa   :  { %1231 = vsyncadd [#allocation3], 4294967232 }
   0xb   :  { %1232 = dma.done.wait [#allocation6], 64  }
   0xc   :  { %1233 = vsyncadd [#allocation6], 4294967232  ;;  %v1294_v0 = vld [vmem:[%s2080_s0] sm:$0xff]  ;;  %v1299_v1 = vld [vmem:[%s2080_s0 + $0x8] sm:$0xff]  ;;  %s1240_s2 = smov 16   ;;  %s1241_s0 = smov 112   ;;  %v53_v30 = vlaneseq }
   0xd   :  { %86 = vst [vmem:[#allocation1] ss:$2 sm:$0xff] %v1294_v0  ;;  %s1242_s10 = smov 1   ;;  %s1243_s11 = smov 127   ;;  %vm2089_vm9 = vcmask 1041408   ;;  %vm2093_vm12 = vcmask 1043456  }
   0xe   :  { %88 = vst [vmem:[#allocation1 + $0x10] ss:$2 sm:$0xff] %v1299_v1  ;;  %v1338_v31 = vand.u32 127, %v53_v30  ;;  %s1246_s15 = smov [#allocation8]   ;;  %s946_s19 = sshll.u32 %s2086_s6, 4  ;;  %s947_s19 = int_to_ptr.hbm [resolvable:$true] %s946_s19 }
   0xf   :  { %s944_s16 = sshll.u32 %s1246_s15, 4  ;;  %s1247_s6 = smov [#allocation7]   ;;  %s945_s16 = int_to_ptr.vmem [resolvable:$true] %s944_s16 }
  0x10   :  { %v1342_v35 = vadd.s32 256, %v1338_v31  ;;  %vm2087_vm0 = vcmp.lt.s32.totalorder %v1338_v31, 16  ;;  %v62_v39 = vand.u32 255, %v1338_v31  ;;  %v1384_v55 = vadd.s32 384, %v1338_v31  ;;  %s930_s20 = sshll.u32 %s1247_s6, 4  ;;  %s932_s23 = sshll.u32 %s2085_s5, 4  ;;  %s931_s20 = int_to_ptr.vmem [resolvable:$true] %s930_s20  ;;  %s933_s23 = int_to_ptr.hbm [resolvable:$true] %s932_s23 }
  0x11   :  { %vm2088_vm3 = vcmp.lt.s32.totalorder %v1338_v31, 112  ;;  %vm2090_vm7 = vcmp.lt.s32.totalorder %v1338_v31, 127  ;;  %vm2094_vm10 = vcmp.lt.s32.totalorder %v1338_v31, 1  ;;  %s1248_s24 = smov 512   ;;  %s1249_s25 = smov 32  }
  0x12   :  { %v64_v36 = vand.u32 255, %v1342_v35  ;;  %vm1357_vm2 = vcmp.lt.s32.totalorder %v62_v39, 16  ;;  %v65_v63 = vand.u32 255, %v1384_v55 }
  0x14   :  { %v89_v2 = vld.sshfl [vmem:[#allocation1] sm:$0xff pattern:$0x75316420]  ;;  %v90_v3 = vld.sshfl [vmem:[#allocation1 + $0x8] sm:$0xff pattern:$0x75316420] }
  0x15   :  { %v992_v4 = vpack.i.bf16 %v90_v3, %v89_v2  ;;  %118 = vst [vmem:[#allocation1] ss:$2 sm:$0xff] %v1294_v0  ;;  %v91_v5 = vld.sshfl [vmem:[#allocation1 + $0x10] sm:$0xff pattern:$0x75316420]  ;;  %vm1347_vm1 = vcmp.lt.s32.totalorder %v64_v36, 16 }
  0x16   :  { %v92_v6 = vld.sshfl [vmem:[#allocation1 + $0x18] sm:$0xff pattern:$0x75316420]  ;;  %vm1404_vm4 = vcmp.ge.s32.totalorder %v65_v63, 240 }
  0x17   :  { %993 = vrot.lane.b32.xlu1 %v992_v4, %s1240_s2  ;;  %120 = vst [vmem:[#allocation1 + $0x10] ss:$2 sm:$0xff] %v1299_v1  ;;  %v997_v7 = vpack.i.bf16 %v92_v6, %v91_v5  ;;  %v1400_v4 = vadd.s32 128, %v1338_v31 }
  0x1c   :  { %v1306_v8 = vld.sshfl [vmem:[#allocation1] sm:$0xff pattern:$0x75316420] }
  0x1d   :  { %133 = vst [vmem:[#allocation1] ss:$2 sm:$0xff] %v1294_v0 }
  0x1e   :  { %v123_v9 = vld.sshfl [vmem:[#allocation1 + $0x10] sm:$0xff pattern:$0x75316420] }
  0x1f   :  { %135 = vst [vmem:[#allocation1 + $0x10] ss:$2 sm:$0xff] %v1299_v1  ;;  %998 = vrot.lane.b32.xlu1 %v997_v7, %s1240_s2  ;;  %v63_v7 = vand.u32 255, %v1400_v4 }
  0x21   :  { %vm1420_vm5 = vcmp.ge.s32.totalorder %v63_v7, 240 }
  0x24   :  { %v136_v10 = vld.sshfl [vmem:[#allocation1] sm:$0xff pattern:$0x75316420]  ;;  %v137_v11 = vld.sshfl [vmem:[#allocation1 + $0x8] sm:$0xff pattern:$0x75316420] }
  0x25   :  { %165 = vst [vmem:[#allocation1] ss:$2 sm:$0xff] %v1294_v0 }
  0x26   :  { %v139_v12 = vld.sshfl [vmem:[#allocation1 + $0x18] sm:$0xff pattern:$0x75316420]  ;;  %v138_v13 = vld.sshfl [vmem:[#allocation1 + $0x10] sm:$0xff pattern:$0x75316420] }
  0x27   :  { %v982_v14 = vpack.i.bf16 %v139_v12, %v136_v10  ;;  %167 = vst [vmem:[#allocation1 + $0x10] ss:$2 sm:$0xff] %v1299_v1  ;;  %v987_v16 = vpack.i.bf16 %v138_v13, %v137_v11 }
  0x29   :  { %983 = vrot.lane.b32.xlu0 %v982_v14, %s1241_s0 }
  0x2c   :  { %v1314_v15 = vld.sshfl [vmem:[#allocation1 + $0x8] sm:$0xff pattern:$0x75316420] }
  0x2d   :  { %230 = vst [vmem:[#allocation1] ss:$2 sm:$0xff] %v1294_v0 }
  0x2e   :  { %v1317_v17 = vld.sshfl [vmem:[#allocation1 + $0x18] sm:$0xff pattern:$0x75316420] }
  0x2f   :  { %232 = vst [vmem:[#allocation1 + $0x10] ss:$2 sm:$0xff] %v1299_v1 }
  0x31   :  { %988 = vrot.lane.b32.xlu0 %v987_v16, %s1241_s0 }
  0x34   :  { %v233_v18 = vld.sshfl [vmem:[#allocation1] sm:$0xff pattern:$0x75316420]  ;;  %v234_v19 = vld.sshfl [vmem:[#allocation1 + $0x8] sm:$0xff pattern:$0x75316420] }
  0x35   :  { %253 = vst [vmem:[#allocation1] ss:$2 sm:$0xff] %v1294_v0 }
  0x36   :  { %v1322_v20 = vld.sshfl [vmem:[#allocation1 + $0x10] sm:$0xff pattern:$0x75316420]  ;;  %v236_v21 = vld.sshfl [vmem:[#allocation1 + $0x18] sm:$0xff pattern:$0x75316420] }
  0x37   :  { %255 = vst [vmem:[#allocation1 + $0x10] ss:$2 sm:$0xff] %v1299_v1  ;;  %v1002_v22 = vpack.i.bf16 %v234_v19, %v236_v21 }
  0x39   :  { %1003 = vrot.lane.b32.xlu0 %v1002_v22, %s1242_s10 }
  0x3c   :  { %v1326_v23 = vld.sshfl [vmem:[#allocation1] sm:$0xff pattern:$0x75316420]  ;;  %v1328_v24 = vld.sshfl [vmem:[#allocation1 + $0x8] sm:$0xff pattern:$0x75316420] }
  0x3d   :  { %268 = vst [vmem:[#allocation1] ss:$2 sm:$0xff] %v1294_v0 }
  0x3e   :  { %v1331_v25 = vld.sshfl [vmem:[#allocation1 + $0x10] sm:$0xff pattern:$0x75316420]  ;;  %v1333_v26 = vld.sshfl [vmem:[#allocation1 + $0x18] sm:$0xff pattern:$0x75316420] }
  0x3f   :  { %270 = vst [vmem:[#allocation1 + $0x10] ss:$2 sm:$0xff] %v1299_v1 }
  0x44   :  { %v272_v32 = vld.sshfl [vmem:[#allocation1 + $0x8] sm:$0xff pattern:$0x75316420]  ;;  %v271_v33 = vld.sshfl [vmem:[#allocation1] sm:$0xff pattern:$0x75316420] }
  0x45   :  { %291 = vst [vmem:[#allocation1] ss:$2 sm:$0xff] %v1294_v0 }
  0x46   :  { %v273_v27 = vld.sshfl [vmem:[#allocation1 + $0x10] sm:$0xff pattern:$0x75316420]  ;;  %v274_v28 = vld.sshfl [vmem:[#allocation1 + $0x18] sm:$0xff pattern:$0x75316420] }
  0x47   :  { %v1007_v29 = vpack.i.bf16 %v273_v27, %v274_v28  ;;  %293 = vst [vmem:[#allocation1 + $0x10] ss:$2 sm:$0xff] %v1299_v1  ;;  %v60_v27 = vand.u32 15, %v1342_v35 }
  0x49   :  { %1008 = vrot.lane.b32.xlu0 %v1007_v29, %s1243_s11  ;;  %v61_v29 = vand.u32 15, %v1384_v55  ;;  %vm1466_vm6 = vcmp.eq.s32.totalorder %v60_v27, 15  ;;  %vm1551_vm14 = vcmp.eq.s32.totalorder %v60_v27, 0 }
  0x4b   :  { %vm1475_vm8 = vcmp.eq.s32.totalorder %v61_v29, 15  ;;  %vm1521_vm11 = vcmp.eq.s32.totalorder %v61_v29, 0 }
  0x4c   :  { %v1448_v19 = vld.sshfl [vmem:[#allocation1] sm:$0xff pattern:$0x75316420] }
  0x89   :  { %v994_v34 = vpop.permute.xlu1 %993 }
  0x8a   :  { %v996_v37 = vunpack.i.h.bf16 %v994_v34  ;;  %v995_v38 = vunpack.i.l.bf16 %v994_v34 }
  0x8c   :  { %v1381_v54 = vsel %vm2087_vm0, %v995_v38, %v996_v37 }
  0x91   :  { %v999_v40 = vpop.permute.xlu1 %998 }
  0x92   :  { %v1001_v41 = vunpack.i.h.bf16 %v999_v40  ;;  %v1000_v42 = vunpack.i.l.bf16 %v999_v40 }
  0x94   :  { %v1353_v44 = vsel %vm2087_vm0, %v1000_v42, %v1001_v41  ;;  %v107_v45 = vsel %vm2087_vm0, %v996_v37, %v1000_v42  ;;  %v109_v47 = vsel %vm2087_vm0, %v1001_v41, %v995_v38 }
  0x95   :  { %v1012_v48 = vpack.i.bf16 %v272_v32, %v1353_v44  ;;  %v1366_v49 = vsel %vm1347_vm1, %v123_v9, %v107_v45  ;;  %v1374_v51 = vsel %vm1357_vm2, %v1306_v8, %v109_v47 }
  0x96   :  { %v1017_v50 = vpack.i.bf16 %v1353_v44, %v1366_v49  ;;  %v1047_v53 = vpack.i.bf16 %v1374_v51, %v233_v18  ;;  %v1446_v18 = vld.sshfl [vmem:[#allocation1 + $0x8] sm:$0xff pattern:$0x75316420] }
  0x97   :  { %1013 = vrot.lane.b32.xlu0 %v1012_v48, %s1243_s11  ;;  %362 = vst [vmem:[#allocation1] ss:$2 sm:$0xff] %v1294_v0 }
  0x98   :  { %1018 = vrot.lane.b32.xlu2 %v1017_v50, %s1242_s10 }
  0x9b   :  { %v984_v52 = vpop.permute.xlu0 %983 }
  0x9c   :  { %v986_v57 = vunpack.i.h.bf16 %v984_v52  ;;  %v985_v58 = vunpack.i.l.bf16 %v984_v52 }
  0x9e   :  { %v156_v6 = vsel %vm2088_vm3, %v986_v57, %v985_v58 }
  0x9f   :  { %1048 = vrot.lane.b32.xlu0 %v1047_v53, %s1242_s10  ;;  %v1414_v8 = vsel %vm1404_vm4, %v1317_v17, %v156_v6  ;;  %v1443_v17 = vld.sshfl [vmem:[#allocation1 + $0x18] sm:$0xff pattern:$0x75316420] }
  0xa3   :  { %v989_v56 = vpop.permute.xlu0 %988 }
  0xa4   :  { %v991_v59 = vunpack.i.h.bf16 %v989_v56  ;;  %v990_v60 = vunpack.i.l.bf16 %v989_v56 }
  0xa6   :  { %v1389_v61 = vsel %vm2088_vm3, %v991_v59, %v986_v57  ;;  %v1393_v62 = vsel %vm2088_vm3, %v985_v58, %v990_v60  ;;  %v154_v12 = vsel %vm2088_vm3, %v990_v60, %v991_v59  ;;  %v345_v60 = vrot.slane %v1353_v44, 4 }
  0xa7   :  { %v1027_v2 = vpack.i.bf16 %v1393_v62, %v1381_v54  ;;  %v1022_v3 = vpack.i.bf16 %v271_v33, %v1389_v61  ;;  %v1037_v9 = vpack.i.bf16 %v1414_v8, %v1389_v61  ;;  %v1032_v10 = vpack.i.bf16 %v1414_v8, %v1393_v62 }
  0xa8   :  { %v1431_v13 = vsel %vm1420_vm5, %v1314_v15, %v154_v12  ;;  %v296_v15 = vld.sshfl [vmem:[#allocation1 + $0x10] sm:$0xff pattern:$0x75316420]  ;;  %v391_v63 = vrot.slane %v1389_v61, 4  ;;  %v58_v12 = vand.u32 15, %v1338_v31 }
  0xa9   :  { %1028 = vrot.lane.b32.xlu1 %v1027_v2, %s1242_s10  ;;  %1023 = vrot.lane.b32.xlu2 %v1022_v3, %s1243_s11  ;;  %v1042_v14 = vpack.i.bf16 %v1322_v20, %v1431_v13  ;;  %v1052_v16 = vpack.i.bf16 %v1374_v51, %v1431_v13  ;;  %364 = vst [vmem:[#allocation1 + $0x10] ss:$2 sm:$0xff] %v1299_v1  ;;  %v392_v2 = vrot.slane %v1414_v8, 4  ;;  %v344_v3 = vrot.slane %v1366_v49, 4 }
  0xaa   :  { %vm1537_vm13 = vcmp.eq.s32.totalorder %v58_v12, 15  ;;  %vm1582_vm0 = vcmp.eq.s32.totalorder %v58_v12, 0 }
  0xab   :  { %v1455_v22 = vpop.permute.xlu0 %1003 }
  0xac   :  { %v1005_v29 = vunpack.i.l.bf16 %v1455_v22 }
  0xb1   :  { %1038 = vrot.lane.b32.xlu1 %v1037_v9, %s1242_s10  ;;  %1033 = vrot.lane.b32.xlu2 %v1032_v10, %s1243_s11 }
  0xb9   :  { %1043 = vrot.lane.b32.xlu2 %v1042_v14, %s1242_s10  ;;  %1053 = vrot.lane.b32.xlu1 %v1052_v16, %s1243_s11  ;;  %v2113_v16 = vmov 0 }
  0xba   :  { %v2114_v16 = vsel %vm1521_vm11, 4294967295, %v2113_v16 }
  0xbb   :  { %v1009_v41 = vpop.permute.xlu0 %1008 }
  0xbc   :  { %v1010_v47 = vunpack.i.l.bf16 %v1009_v41  ;;  %v1011_v50 = vunpack.i.h.bf16 %v1009_v41 }
  0xbe   :  { %v287_v56 = vsel %vm2090_vm7, %v1011_v50, %v1010_v47 }
  0xbf   :  { %v304_v9 = vsel %vm1466_vm6, %v296_v15, %v287_v56  ;;  %v496_v15 = vld [vmem:[%s2083_s3] sm:$0xff] }
  0xc1   :  { %209 = vrot.lane.b32.xlu2 %v1366_v49, %s1243_s11  ;;  %207 = vrot.lane.b32.xlu1 %v1381_v54, %s1243_s11 }
  0xf2   :  { %v1451_v20 = vpop.permute.xlu2 %1018 }
  0xf3   :  { %v1021_v53 = vunpack.i.h.bf16 %v1451_v20  ;;  %v1020_v55 = vunpack.i.l.bf16 %v1451_v20 }
  0xf5   :  { %v189_v14 = vsel %vm2094_vm10, %v1020_v55, %v1021_v53 }
  0xf6   :  { %v204_v56 = vsel %vm1521_vm11, %v1353_v44, %v189_v14 }
 0x103   :  { %v1453_v21 = vpop.permute.xlu2 %1023 }
 0x104   :  { %v1025_v1 = vunpack.i.l.bf16 %v1453_v21  ;;  %v1026_v48 = vunpack.i.h.bf16 %v1453_v21 }
 0x106   :  { %v290_v57 = vsel %vm2090_vm7, %v1010_v47, %v1026_v48 }
 0x107   :  { %v305_v10 = vsel %vm1475_vm8, %v1443_v17, %v290_v57 }
 0x109   :  { %v1500_v58 = vpop.permute.xlu0 %1013 }
 0x10a   :  { %v1016_v7 = vunpack.i.h.bf16 %v1500_v58  ;;  %v1015_v41 = vunpack.i.l.bf16 %v1500_v58 }
 0x10b   :  { %v1458_v28 = vpop.permute.xlu2 %1033 }
 0x10c   :  { %v1036_v30 = vunpack.i.h.bf16 %v1458_v28  ;;  %v1035_v32 = vunpack.i.l.bf16 %v1458_v28  ;;  %v288_v57 = vsel %vm2090_vm7, %v1016_v7, %v1011_v50 }
 0x10e   :  { %v330_v33 = vsel %vm2090_vm7, %v1025_v1, %v1036_v30  ;;  %v333_v36 = vsel %vm2090_vm7, %v1036_v30, %v1035_v32  ;;  %v59_v30 = vand.u32 15, %v1400_v4  ;;  %v368_v4 = vld.sshfl [vmem:[#allocation1 + $0x18] sm:$0xff pattern:$0x75316420] }
 0x10f   :  { %v336_v37 = vsel %vm1466_vm6, %v1389_v61, %v330_v33  ;;  %v337_v38 = vsel %vm1475_vm8, %v1414_v8, %v333_v36  ;;  %v1006_v33 = vunpack.i.h.bf16 %v1455_v22 }
 0x110   :  { %v424_v39 = vpack.c.bf16 %v336_v37, %v336_v37  ;;  %v425_v40 = vpack.c.bf16 %v337_v38, %v337_v38  ;;  %v1244_v38 = vmov 0   ;;  %vm1555_vm15 = vcmp.eq.s32.totalorder %v59_v30, 15 }
 0x111   :  { %1057 = vset.pattern.permute.xlu2 %v1244_v38  ;;  %1133 = vset.pattern.permute.xlu0 %v1244_v38  ;;  %v1570_v38 = vsel %vm2093_vm12, %v204_v56, %v345_v60  ;;  %v303_v60 = vsel %vm1555_vm15, %v1446_v18, %v288_v57  ;;  %vm1610_vm3 = vcmp.eq.s32.totalorder %v59_v30, 0 }
 0x112   :  { %v439_v42 = vsel %vm2089_vm9, %v424_v39, 0  ;;  %v442_v45 = vsel %vm2089_vm9, %v425_v40, 0  ;;  %v379_v39 = vrot.slane %v304_v9, 4  ;;  %v380_v40 = vrot.slane %v305_v10, 4  ;;  %499 = vperm.xlu2 %1057, %v496_v15  }
 0x113   :  { %475 = vmatpush.bf16.msra.mxu2 %v439_v42  ;;  %488 = vmatpush.bf16.msra.mxu3 %v442_v45  ;;  %v1492_v52 = vpop.permute.xlu2 %1043  ;;  %v289_v42 = vsel %vm2090_vm7, %v1026_v48, %v1016_v7  ;;  %v367_v45 = vld.sshfl [vmem:[#allocation1 + $0x10] sm:$0xff pattern:$0x75316420]  ;;  %v2117_v48 = vmov 0  ;;  %vm427_vm9 = vcmask 293888  }
 0x114   :  { %v1046_v17 = vunpack.i.h.bf16 %v1492_v52  ;;  %v1045_v9 = vunpack.i.l.bf16 %v1492_v52  ;;  %v2118_v48 = vsel %vm1551_vm14, 4294967295, %v2117_v48  ;;  %v408_v27 = vsel %vm2093_vm12, %v367_v45, %v379_v39 }
 0x115   :  { %v409_v14 = vsel %vm2093_vm12, %v368_v4, %v380_v40  ;;  %v302_v37 = vsel %vm1537_vm13, %v1448_v19, %v289_v42  ;;  %v2121_v39 = vmov 0  ;;  %v1049_v4 = vpop.permute.xlu0 %1048 }
 0x116   :  { %v250_v50 = vsel %vm2094_vm10, %v1006_v33, %v1046_v17  ;;  %v2122_v39 = vsel %vm1582_vm0, 4294967295, %v2121_v39  ;;  %v249_v18 = vsel %vm2094_vm10, %v1046_v17, %v1005_v29  ;;  %v1050_v45 = vunpack.i.l.bf16 %v1049_v4 }
 0x117   :  { %v266_v42 = vsel %vm1551_vm14, %v1331_v25, %v250_v50  ;;  %v377_v25 = vrot.slane %v302_v37, 4  ;;  %v2123_v50 = vmov 0  ;;  %v1051_v17 = vunpack.i.h.bf16 %v1049_v4 }
 0x118   :  { %v2124_v50 = vsel %vm1610_vm3, 4294967295, %v2123_v50  ;;  %v251_v37 = vsel %vm2094_vm10, %v1050_v45, %v1006_v33 }
 0x11b   :  { %v1502_v59 = vpop.permute.xlu1 %1028  ;;  %v1547_v10 = vpop.permute.xlu2 %209 }
 0x11c   :  { %v1030_v36 = vunpack.i.l.bf16 %v1502_v59  ;;  %v214_v6 = vsel %vm2090_vm7, %v1547_v10, %v1015_v41  ;;  %v1031_v57 = vunpack.i.h.bf16 %v1502_v59 }
 0x11e   :  { %v190_v52 = vsel %vm2094_vm10, %v1030_v36, %v1020_v55  ;;  %v316_v4 = vsel %vm2094_vm10, %v1031_v57, %v1045_v9 }
 0x11f   :  { %v203_v12 = vsel %vm1551_vm14, %v1366_v49, %v190_v52 }
 0x123   :  { %v1039_v58 = vpop.permute.xlu1 %1038 }
 0x124   :  { %v1041_v7 = vunpack.i.h.bf16 %v1039_v58  ;;  %v1040_v35 = vunpack.i.l.bf16 %v1039_v58 }
 0x126   :  { %v314_v55 = vsel %vm2094_vm10, %v1040_v35, %v1041_v7  ;;  %v315_v58 = vsel %vm2094_vm10, %v1045_v9, %v1040_v35 }
 0x127   :  { %v320_v19 = vsel %vm1551_vm14, %v1389_v61, %v315_v58  ;;  %v321_v40 = vsel %vm1521_vm11, %v1414_v8, %v314_v55  ;;  %v228_v8 = vsel %vm1466_vm6, %v1366_v49, %v214_v6  ;;  %v356_v55 = vrot.slane %v266_v42, 4  ;;  %v366_v42 = vld.sshfl [vmem:[#allocation1 + $0x8] sm:$0xff pattern:$0x75316420] }
 0x128   :  { %v412_v56 = vsel %vm2093_vm12, %v320_v19, %v391_v63  ;;  %v413_v61 = vsel %vm2093_vm12, %v321_v40, %v392_v2  ;;  %v400_v58 = vsel %vm2093_vm12, %v203_v12, %v344_v3  ;;  %v267_v2 = vsel %vm1521_vm11, %v1333_v26, %v249_v18  ;;  %v365_v19 = vld.sshfl [vmem:[#allocation1] sm:$0xff pattern:$0x75316420] }
 0x129   :  { %v420_v35 = vpack.c.bf16 %v412_v56, %v408_v27  ;;  %v421_v52 = vpack.c.bf16 %v413_v61, %v409_v14  ;;  %v378_v49 = vrot.slane %v303_v60, 4  ;;  %v317_v6 = vsel %vm2094_vm10, %v1041_v7, %v1031_v57 }
 0x12a   :  { %v404_v30 = vsel %vm2093_vm12, %v228_v8, %v356_v55  ;;  %v252_v14 = vsel %vm2094_vm10, %v1005_v29, %v1050_v45  ;;  %v357_v33 = vrot.slane %v267_v2, 4  ;;  %v426_v29 = vld [vmem:[#allocation2] sm:$0xf]  ;;  %v318_v21 = vsel %vm1582_vm0, %v1393_v62, %v317_v6 }
 0x12b   :  { %476 = vmatpush.bf16.msra.mxu2 %v420_v35  ;;  %489 = vmatpush.bf16.msra.mxu3 %v421_v52  ;;  %v1054_v63 = vpop.permute.xlu1 %1053  ;;  %v416_v26 = vpack.c.bf16 %v404_v30, %v400_v58  ;;  %v319_v12 = vsel %vm1610_vm3, %v1431_v13, %v316_v4  ;;  %v192_v18 = vsel %vm2094_vm10, %v1021_v53, %v1051_v17  ;;  %v2127_v8 = vrot.slane %v1393_v62, 4 }
 0x12c   :  { %v1056_v27 = vunpack.i.h.bf16 %v1054_v63  ;;  %v1055_v3 = vunpack.i.l.bf16 %v1054_v63  ;;  %v406_v45 = vsel %vm2093_vm12, %v365_v19, %v377_v25  ;;  %v264_v56 = vsel %vm1582_vm0, %v1326_v23, %v252_v14 }
 0x12d   :  { %v410_v20 = vsel %vm2093_vm12, %v318_v21, %v2127_v8  ;;  %v265_v53 = vsel %vm1610_vm3, %v1328_v24, %v251_v37  ;;  %v407_v35 = vsel %vm2093_vm12, %v366_v42, %v378_v49  ;;  %v2128_v52 = vrot.slane %v1431_v13, 4 }
 0x12e   :  { %v217_v60 = vsel %vm2090_vm7, %v1015_v41, %v1056_v27  ;;  %v332_v7 = vsel %vm2090_vm7, %v1035_v32, %v1055_v3  ;;  %v331_v22 = vsel %vm2090_vm7, %v1055_v3, %v1025_v1  ;;  %vm2125_vm7 = vcmask 1041408  }
 0x12f   :  { %477 = vmatpush.bf16.msra.mxu2 %v416_v26  ;;  %v334_v9 = vsel %vm1537_vm13, %v1393_v62, %v332_v7  ;;  %v335_v28 = vsel %vm1555_vm15, %v1431_v13, %v331_v22  ;;  %v229_v32 = vsel %vm1475_vm8, %v1353_v44, %v217_v60  ;;  %vm2126_vm11 = vmmov %vm2125_vm7  ;;  %v411_v62 = vsel %vm2093_vm12, %v319_v12, %v2128_v52 }
 0x130   :  { %v422_v1 = vpack.c.bf16 %v334_v9, %v334_v9  ;;  %v423_v41 = vpack.c.bf16 %v335_v28, %v335_v28  ;;  %v405_v40 = vsel %vm2093_vm12, %v229_v32, %v357_v33  ;;  %v201_v59 = vsel %vm1582_vm0, %v1374_v51, %v192_v18 }
 0x131   :  { %v417_v44 = vpack.c.bf16 %v405_v40, %v1570_v38  ;;  %v191_v38 = vsel %vm2094_vm10, %v1051_v17, %v1030_v36  ;;  %v354_v36 = vrot.slane %v264_v56, 4  ;;  %v418_v25 = vpack.c.bf16 %v410_v20, %v406_v45 }
 0x132   :  { %964 = vmatmul.msk.bf16.vlgmr.msra.gmra.mxu2 %vm427_vm9, %v426_v29  ;;  %v433_v61 = vsel %vm2125_vm7, %v422_v1, 0  ;;  %v436_v57 = vsel %vm2126_vm11, %v423_v41, 0  ;;  %vm2129_vm7 = vcmp.lt.s32.totalorder %v1338_v31, 127  ;;  %v355_v17 = vrot.slane %v265_v53, 4 }
 0x133   :  { %v208_v23 = vpop.permute.xlu1 %207  ;;  %449 = vmatpush.bf16.msra.mxu0 %v433_v61  ;;  %462 = vmatpush.bf16.msra.mxu1 %v436_v57  ;;  %vm2130_vm11 = vmmov %vm2129_vm7  ;;  %v342_v63 = vrot.slane %v1374_v51, 4  ;;  %v202_v49 = vsel %vm1610_vm3, %v1381_v54, %v191_v38  ;;  %v343_v6 = vrot.slane %v1381_v54, 4 }
 0x134   :  { %v215_v55 = vsel %vm2129_vm7, %v208_v23, %v1547_v10  ;;  %v216_v24 = vsel %vm2130_vm11, %v1056_v27, %v208_v23  ;;  %490 = vmatpush.bf16.msra.mxu3 %v417_v44  ;;  %v419_v10 = vpack.c.bf16 %v411_v62, %v407_v35 }
 0x135   :  { %v226_v58 = vsel %vm1537_vm13, %v1374_v51, %v216_v24  ;;  %v227_v13 = vsel %vm1555_vm15, %v1381_v54, %v215_v55  ;;  %v398_v3 = vsel %vm2093_vm12, %v201_v59, %v342_v63  ;;  %v399_v37 = vsel %vm2093_vm12, %v202_v49, %v343_v6 }
 0x136   :  { %v402_v2 = vsel %vm2093_vm12, %v226_v58, %v354_v36  ;;  %v403_v27 = vsel %vm2093_vm12, %v227_v13, %v355_v17 }
 0x137   :  { %965 = vmatmul.msk.bf16.vlgmr.msra.gmra.mxu3 %vm427_vm9, %v426_v29  ;;  %450 = vmatpush.bf16.msra.mxu0 %v418_v25  ;;  %v414_v30 = vpack.c.bf16 %v402_v2, %v398_v3  ;;  %v415_v51 = vpack.c.bf16 %v403_v27, %v399_v37 }
 0x138   :  { %463 = vmatpush.bf16.msra.mxu1 %v419_v10 }
 0x13b   :  { %451 = vmatpush.bf16.msra.mxu0 %v414_v30 }
 0x13c   :  { %464 = vmatpush.bf16.msra.mxu1 %v415_v51 }
 0x13e   :  { %962 = vmatmul.msk.bf16.vlgmr.msra.gmra.mxu0 %vm427_vm9, %v426_v29 }
 0x13f   :  { %963 = vmatmul.msk.bf16.vlgmr.msra.gmra.mxu1 %vm427_vm9, %v426_v29 }
 0x16c   :  { %v500_v4 = vpop.permute.xlu2 %499 }
 0x1b5   :  { %v479_v14 = vpop.f32.mrf.mxu2 }
 0x1b6   :  { %v508_v26 = vsub.f32 0.0, %v479_v14  ;;  %v504_v60 = vsub.f32 %v479_v14, %v500_v4 }
 0x1b8   :  { %v512_v54 = vsub.f32 %v508_v26, %v500_v4  ;;  %vm516_vm7 = vcmp.ge.f32.partialorder %v504_v60, 0.0  ;;  %v520_v9 = vmul.f32 0.001, %v504_v60 }
 0x1ba   :  { %v492_v7 = vpop.f32.mrf.mxu3  ;;  %vm528_vm11 = vcmp.ge.f32.partialorder %v512_v54, 0.0  ;;  %v532_v1 = vmul.f32 0.01, %v512_v54  ;;  %v524_v56 = vsel %vm516_vm7, %v504_v60, %v520_v9 }
 0x1bb   :  { %v505_v22 = vsub.f32 %v492_v7, %v500_v4  ;;  %v509_v33 = vsub.f32 0.0, %v492_v7  ;;  %v453_v19 = vpop.f32.mrf.mxu0 }
 0x1bc   :  { %v502_v28 = vsub.f32 %v453_v19, %v500_v4  ;;  %v506_v32 = vsub.f32 0.0, %v453_v19  ;;  %v466_v21 = vpop.f32.mrf.mxu1  ;;  %v536_v57 = vsel %vm528_vm11, %v512_v54, %v532_v1 }
 0x1bd   :  { %v513_v41 = vsub.f32 %v509_v33, %v500_v4  ;;  %vm517_vm12 = vcmp.ge.f32.partialorder %v505_v22, 0.0  ;;  %v481_v40 = vpop.f32.mrf.mxu2  ;;  %v521_v29 = vmul.f32 0.001, %v505_v22  ;;  %v503_v18 = vsub.f32 %v466_v21, %v500_v4 }
 0x1be   :  { %v510_v12 = vsub.f32 %v506_v32, %v500_v4  ;;  %v518_v42 = vmul.f32 0.001, %v502_v28  ;;  %vm514_vm10 = vcmp.ge.f32.partialorder %v502_v28, 0.0  ;;  %v507_v45 = vsub.f32 0.0, %v466_v21 }
 0x1bf   :  { %vm529_vm9 = vcmp.ge.f32.partialorder %v513_v41, 0.0  ;;  %v533_v44 = vmul.f32 0.01, %v513_v41  ;;  %v519_v53 = vmul.f32 0.001, %v503_v18  ;;  %v525_v38 = vsel %vm517_vm12, %v505_v22, %v521_v29 }
 0x1c0   :  { %vm526_vm3 = vcmp.ge.f32.partialorder %v510_v12, 0.0  ;;  %v530_v61 = vmul.f32 0.01, %v510_v12  ;;  %v511_v20 = vsub.f32 %v507_v45, %v500_v4  ;;  %v522_v23 = vsel %vm514_vm10, %v502_v28, %v518_v42 }
 0x1c1   :  { %v537_v8 = vsel %vm529_vm9, %v513_v41, %v533_v44  ;;  %vm515_vm0 = vcmp.ge.f32.partialorder %v503_v18, 0.0  ;;  %v1715_v17 = vsub.f32 %v524_v56, %v536_v57 }
 0x1c2   :  { %v534_v35 = vsel %vm526_vm3, %v510_v12, %v530_v61  ;;  %v494_v52 = vpop.f32.mrf.mxu3  ;;  %v1709_v62 = vsub.f32 %v525_v38, %v537_v8  ;;  %vm527_vm14 = vcmp.ge.f32.partialorder %v511_v20, 0.0  ;;  %v531_v24 = vmul.f32 0.01, %v511_v20  ;;  %v759_v61 = vld [vmem:[%s2084_s4] sm:$0xff]  ;;  %s1245_s4 = smov 111  }
 0x1c3   :  { %v1711_v55 = vsub.f32 %v522_v23, %v534_v35  ;;  %v455_v59 = vpop.f32.mrf.mxu0  ;;  %v523_v58 = vsel %vm515_vm0, %v503_v18, %v519_v53  ;;  %vm2131_vm0 = vcmp.lt.s32.totalorder %v1338_v31, 112 }
 0x1c4   :  { %v468_v36 = vpop.f32.mrf.mxu1  ;;  %v535_v13 = vsel %vm527_vm14, %v511_v20, %v531_v24  ;;  %v1073_v49 = vpack.i.bf16 %v1709_v62, %v1715_v17  ;;  %vm2132_vm3 = vmmov %vm2131_vm0 }
 0x1c5   :  { %v1058_v25 = vpack.i.bf16 %v1709_v62, %v1711_v55  ;;  %v1717_v10 = vsub.f32 %v523_v58, %v535_v13  ;;  %vm2133_vm10 = vmmov %vm2131_vm0  ;;  %v1088_v12 = vpack.i.bf16 %v1715_v17, %v1711_v55 }
 0x1c6   :  { %vm2134_vm12 = vmmov %vm2131_vm0 }
 0x1c7   :  { %1059 = vrot.lane.b32.xlu0 %v1058_v25, %s1241_s0  ;;  %v1063_v63 = vpack.i.bf16 %v1715_v17, %v1717_v10  ;;  %v1068_v2 = vpack.i.bf16 %v1717_v10, %v1711_v55 }
 0x1c9   :  { %1064 = vrot.lane.b32.xlu1 %v1063_v63, %s1241_s0  ;;  %1069 = vrot.lane.b32.xlu2 %v1068_v2, %s1240_s2 }
 0x1cf   :  { %1074 = vrot.lane.b32.xlu0 %v1073_v49, %s1240_s2 }
 0x223   :  { %v1070_v26 = vpop.permute.xlu2 %1069 }
 0x224   :  { %v1071_v28 = vunpack.i.l.bf16 %v1070_v26  ;;  %v1072_v40 = vunpack.i.h.bf16 %v1070_v26 }
 0x239   :  { %v1060_v6 = vpop.permute.xlu0 %1059 }
 0x23a   :  { %v1062_v27 = vunpack.i.h.bf16 %v1060_v6  ;;  %v1061_v3 = vunpack.i.l.bf16 %v1060_v6 }
 0x23b   :  { %v1065_v30 = vpop.permute.xlu1 %1064 }
 0x23c   :  { %v569_v37 = vsel %vm2131_vm0, %v1062_v27, %v1061_v3  ;;  %v1067_v51 = vunpack.i.h.bf16 %v1065_v30  ;;  %v1066_v14 = vunpack.i.l.bf16 %v1065_v30  ;;  %vm2143_vm0 = vcmp.lt.s32.totalorder %v1338_v31, 1 }
 0x23d   :  { %v1734_v4 = vsel %vm1404_vm4, %v1709_v62, %v569_v37  ;;  %vm2135_vm4 = vcmp.lt.s32.totalorder %v1338_v31, 16 }
 0x23e   :  { %v567_v60 = vsel %vm2132_vm3, %v1066_v14, %v1067_v51  ;;  %v1740_v54 = vsel %vm2133_vm10, %v1067_v51, %v1062_v27  ;;  %v1744_v7 = vsel %vm2134_vm12, %v1061_v3, %v1066_v14  ;;  %vm2144_vm3 = vcmask 1043456  }
 0x23f   :  { %v1749_v22 = vsel %vm1420_vm5, %v1717_v10, %v567_v60  ;;  %v1078_v5 = vpack.i.bf16 %v1740_v54, %v1744_v7  ;;  %v1103_v29 = vpack.i.bf16 %v1744_v7, %v1734_v4  ;;  %vm2136_vm5 = vmmov %vm2135_vm4 }
 0x240   :  { %v1098_v33 = vpack.i.bf16 %v1740_v54, %v1749_v22  ;;  %v1083_v19 = vpack.i.bf16 %v1749_v22, %v1734_v4  ;;  %vm2145_vm10 = vmmov %vm2144_vm3 }
 0x241   :  { %v1075_v9 = vpop.permute.xlu0 %1074  ;;  %1079 = vrot.lane.b32.xlu1 %v1078_v5, %s1243_s11  ;;  %vm2146_vm12 = vmmov %vm2144_vm3 }
 0x242   :  { %v1077_v32 = vunpack.i.h.bf16 %v1075_v9  ;;  %1099 = vrot.lane.b32.xlu0 %v1098_v33, %s1242_s10  ;;  %1084 = vrot.lane.b32.xlu2 %v1083_v19, %s1243_s11  ;;  %v1076_v1 = vunpack.i.l.bf16 %v1075_v9 }
 0x244   :  { %v553_v11 = vsel %vm2135_vm4, %v1077_v32, %v1071_v28  ;;  %v551_v42 = vsel %vm2136_vm5, %v1072_v40, %v1076_v1  ;;  %vm2148_vm5 = vnez %v2118_v48 }
 0x245   :  { %v1765_v21 = vsel %vm1357_vm2, %v1711_v55, %v553_v11  ;;  %vm2137_vm2 = vmmov %vm2135_vm4  ;;  %v1785_v18 = vsel %vm1347_vm1, %v1715_v17, %v551_v42  ;;  %vm2139_vm1 = vcmp.lt.s32.totalorder %v1338_v31, 127 }
 0x246   :  { %v1108_v41 = vpack.i.bf16 %v1765_v21, %v1709_v62  ;;  %v1780_v46 = vsel %vm2137_vm2, %v1076_v1, %v1077_v32  ;;  %vm2138_vm14 = vmmov %vm2137_vm2 }
 0x247   :  { %v1789_v44 = vsel %vm2138_vm14, %v1071_v28, %v1072_v40  ;;  %v1118_v45 = vpack.i.bf16 %v1780_v46, %v1785_v18  ;;  %vm2140_vm7 = vmmov %vm2139_vm1 }
 0x248   :  { %v1113_v56 = vpack.i.bf16 %v1789_v44, %v1709_v62  ;;  %v1123_v43 = vpack.i.bf16 %v1789_v44, %v1717_v10  ;;  %vm2141_vm11 = vmmov %vm2139_vm1 }
 0x249   :  { %1104 = vrot.lane.b32.xlu1 %v1103_v29, %s1242_s10  ;;  %vm2142_vm9 = vmmov %vm2139_vm1 }
 0x24a   :  { %1109 = vrot.lane.b32.xlu0 %v1108_v41, %s1243_s11  ;;  %1089 = vrot.lane.b32.xlu2 %v1088_v12, %s1243_s11  ;;  %vm2147_vm4 = vmmov %vm2144_vm3 }
 0x24b   :  { %vm2149_vm2 = vmmov %vm2143_vm0 }
 0x24c   :  { %vm2150_vm14 = vmmov %vm2143_vm0 }
 0x251   :  { %1119 = vrot.lane.b32.xlu1 %v1118_v45, %s1243_s11 }
 0x252   :  { %1114 = vrot.lane.b32.xlu0 %v1113_v56, %s1242_s10  ;;  %1094 = vrot.lane.b32.xlu2 %v1063_v63, %s1242_s10 }
 0x259   :  { %1124 = vrot.lane.b32.xlu1 %v1123_v43, %s1243_s11 }
 0x25a   :  { %606 = vrot.lane.b32.xlu0 %v1711_v55, %s1242_s10  ;;  %1129 = vrot.lane.b32.xlu2 %v1118_v45, %s1242_s10 }
 0x261   :  { %574 = vrot.lane.b32.xlu1 %v1765_v21, %s1242_s10 }
 0x262   :  { %762 = vperm.xlu2 %1057, %v759_v61  }
 0x29c   :  { %v1085_v57 = vpop.permute.xlu2 %1084 }
 0x29d   :  { %v1087_v53 = vunpack.i.h.bf16 %v1085_v57  ;;  %v1086_v38 = vunpack.i.l.bf16 %v1085_v57 }
 0x2a4   :  { %v1809_v8 = vpop.permute.xlu2 %1089 }
 0x2a5   :  { %v1092_v28 = vunpack.i.h.bf16 %v1809_v8  ;;  %v1091_v41 = vunpack.i.l.bf16 %v1809_v8 }
 0x2ac   :  { %v1811_v24 = vpop.permute.xlu2 %1094 }
 0x2ad   :  { %v1097_v40 = vunpack.i.h.bf16 %v1811_v24  ;;  %v1096_v29 = vunpack.i.l.bf16 %v1811_v24 }
 0x2b3   :  { %v1080_v20 = vpop.permute.xlu1 %1079 }
 0x2b4   :  { %v1082_v23 = vunpack.i.h.bf16 %v1080_v20  ;;  %v1081_v35 = vunpack.i.l.bf16 %v1080_v20  ;;  %v1100_v52 = vpop.permute.xlu0 %1099  ;;  %v1856_v61 = vpop.permute.xlu2 %1129 }
 0x2b5   :  { %v1102_v59 = vunpack.i.h.bf16 %v1100_v52  ;;  %v1101_v36 = vunpack.i.l.bf16 %v1100_v52 }
 0x2b6   :  { %v664_v58 = vsel %vm2139_vm1, %v1081_v35, %v1087_v53  ;;  %v663_v13 = vsel %vm2140_vm7, %v1087_v53, %v1082_v23  ;;  %v662_v25 = vsel %vm2141_vm11, %v1082_v23, %v1086_v38  ;;  %v665_v63 = vsel %vm2142_vm9, %v1086_v38, %v1081_v35  ;;  %vm2151_vm1 = vmmov %vm2143_vm0 }
 0x2b7   :  { %v666_v2 = vsel %vm1537_vm13, %v1744_v7, %v664_v58  ;;  %v667_v49 = vsel %vm1555_vm15, %v1749_v22, %v663_v13  ;;  %v668_v6 = vsel %vm1466_vm6, %v1740_v54, %v662_v25  ;;  %v669_v27 = vsel %vm1475_vm8, %v1734_v4, %v665_v63 }
 0x2b8   :  { %v686_v3 = vpack.c.bf16 %v666_v2, %v666_v2  ;;  %v687_v30 = vpack.c.bf16 %v667_v49, %v667_v49  ;;  %v688_v37 = vpack.c.bf16 %v668_v6, %v668_v6  ;;  %v689_v51 = vpack.c.bf16 %v669_v27, %v669_v27 }
 0x2b9   :  { %v647_v14 = vsel %vm2143_vm0, %v1101_v36, %v1102_v59  ;;  %vm2152_vm7 = vnez %v2122_v39  ;;  %vm2153_vm11 = vnez %v2124_v50  ;;  %vm2154_vm9 = vnez %v2114_v16 }
 0x2ba   :  { %v696_v26 = vsel %vm2144_vm3, %v686_v3, 0  ;;  %v699_v60 = vsel %vm2145_vm10, %v687_v30, 0  ;;  %v702_v5 = vsel %vm2146_vm12, %v688_v37, 0  ;;  %v705_v33 = vsel %vm2147_vm4, %v689_v51, 0  ;;  %vm2157_vm10 = vmmov %vm2151_vm1 }
 0x2bb   :  { %v1105_v19 = vpop.permute.xlu1 %1104  ;;  %710 = vmatpush.bf16.msrb.mxu0 %v696_v26  ;;  %723 = vmatpush.bf16.msrb.mxu1 %v699_v60  ;;  %v652_v9 = vsel %vm2148_vm5, %v1740_v54, %v647_v14  ;;  %vm2155_vm0 = vcmp.lt.s32.totalorder %v1338_v31, 127  ;;  %v1131_v58 = vunpack.i.l.bf16 %v1856_v61 }
 0x2bc   :  { %v1107_v32 = vunpack.i.h.bf16 %v1105_v19  ;;  %v1106_v11 = vunpack.i.l.bf16 %v1105_v19  ;;  %736 = vmatpush.bf16.msrb.mxu2 %v702_v5  ;;  %749 = vmatpush.bf16.msrb.mxu3 %v705_v33  ;;  %v1843_v1 = vpop.permute.xlu0 %1109  ;;  %v684_v42 = vpack.c.bf16 %v1740_v54, %v652_v9  ;;  %vm2156_vm3 = vmmov %vm2155_vm0 }
 0x2bd   :  { %v1111_v12 = vunpack.i.l.bf16 %v1843_v1  ;;  %v1112_v13 = vunpack.i.h.bf16 %v1843_v1  ;;  %vm2158_vm12 = vmmov %vm2155_vm0 }
 0x2be   :  { %v649_v45 = vsel %vm2149_vm2, %v1106_v11, %v1107_v32  ;;  %v648_v56 = vsel %vm2150_vm14, %v1107_v32, %v1101_v36  ;;  %v646_v43 = vsel %vm2151_vm1, %v1102_v59, %v1106_v11  ;;  %v1132_v36 = vunpack.i.h.bf16 %v1856_v61  ;;  %vm2159_vm4 = vmmov %vm2155_vm0  ;;  %v763_v61 = vpop.permute.xlu2 %762 }
 0x2bf   :  { %v650_v57 = vsel %vm2152_vm7, %v1744_v7, %v649_v45  ;;  %v651_v20 = vsel %vm2153_vm11, %v1749_v22, %v648_v56  ;;  %v653_v54 = vsel %vm2154_vm9, %v1734_v4, %v646_v43  ;;  %v630_v53 = vsel %vm2155_vm0, %v1092_v28, %v1111_v12  ;;  %vm2160_vm2 = vmmov %vm2151_vm1 }
 0x2c0   :  { %737 = vmatpush.bf16.msrb.mxu2 %v684_v42  ;;  %v682_v38 = vpack.c.bf16 %v1744_v7, %v650_v57  ;;  %v683_v23 = vpack.c.bf16 %v1749_v22, %v651_v20  ;;  %v685_v35 = vpack.c.bf16 %v1734_v4, %v653_v54  ;;  %v636_v52 = vsel %vm1466_vm6, %v1715_v17, %v630_v53  ;;  %vm2161_vm14 = vmmov %vm2151_vm1  ;;  %v690_v42 = vld [vmem:[#allocation5] sm:$0xf] }
 0x2c1   :  { %v680_v24 = vpack.c.bf16 %v636_v52, %v1715_v17  ;;  %v633_v59 = vsel %vm2156_vm3, %v1111_v12, %v1091_v41  ;;  %v615_v22 = vsel %vm2157_vm10, %v1096_v29, %v1097_v40  ;;  %v582_v51 = vsel %vm2160_vm2, %v1131_v58, %v1132_v36  ;;  %vm2165_vm3 = vmmov %vm2155_vm0 }
 0x2c2   :  { %711 = vmatpush.bf16.msrb.mxu0 %v682_v38  ;;  %724 = vmatpush.bf16.msrb.mxu1 %v683_v23  ;;  %v637_v4 = vsel %vm1475_vm8, %v1709_v62, %v633_v59  ;;  %v620_v30 = vsel %vm2148_vm5, %v1715_v17, %v615_v22  ;;  %v589_v34 = vsel %vm2154_vm9, %v1780_v46, %v582_v51  ;;  %vm2166_vm10 = vmmov %vm2155_vm0 }
 0x2c3   :  { %750 = vmatpush.bf16.msrb.mxu3 %v685_v35  ;;  %v1120_v7 = vpop.permute.xlu1 %1119  ;;  %v681_v27 = vpack.c.bf16 %v637_v4, %v1709_v62  ;;  %v673_v12 = vpack.c.bf16 %v1780_v46, %v589_v34 }
 0x2c4   :  { %v1122_v25 = vunpack.i.h.bf16 %v1120_v7  ;;  %v1121_v63 = vunpack.i.l.bf16 %v1120_v7  ;;  %738 = vmatpush.bf16.msrb.mxu2 %v680_v24  ;;  %v1115_v2 = vpop.permute.xlu0 %1114 }
 0x2c5   :  { %v1117_v49 = vunpack.i.h.bf16 %v1115_v2  ;;  %v1116_v6 = vunpack.i.l.bf16 %v1115_v2 }
 0x2c6   :  { %v598_v3 = vsel %vm2158_vm12, %v1121_v63, %v1122_v25  ;;  %v601_v37 = vsel %vm2159_vm4, %v1122_v25, %v1112_v13  ;;  %vm2167_vm12 = vmmov %vm2151_vm1 }
 0x2c7   :  { %751 = vmatpush.bf16.msrb.mxu3 %v681_v27  ;;  %v604_v14 = vsel %vm1466_vm6, %v1785_v18, %v598_v3  ;;  %v605_v26 = vsel %vm1475_vm8, %v1780_v46, %v601_v37  ;;  %v614_v17 = vsel %vm2161_vm14, %v1097_v40, %v1116_v6  ;;  %v583_v60 = vsel %vm2151_vm1, %v1117_v49, %v1131_v58  ;;  %vm2162_vm6 = vmmov %vm2151_vm1 }
 0x2c8   :  { %v676_v5 = vpack.c.bf16 %v620_v30, %v604_v14  ;;  %v621_v33 = vsel %vm2154_vm9, %v1709_v62, %v614_v17  ;;  %v588_v0 = vsel %vm2148_vm5, %v1785_v18, %v583_v60  ;;  %vm691_vm8 = vcmask 588800   ;;  %vm2163_vm5 = vmmov %vm2151_vm1 }
 0x2c9   :  { %v677_v19 = vpack.c.bf16 %v621_v33, %v605_v26  ;;  %v672_v40 = vpack.c.bf16 %v1785_v18, %v588_v0  ;;  %vm2164_vm9 = vmmov %vm2155_vm0 }
 0x2ca   :  { %739 = vmatpush.bf16.msrb.mxu2 %v676_v5 }
 0x2cb   :  { %v1125_v9 = vpop.permute.xlu1 %1124  ;;  %752 = vmatpush.bf16.msrb.mxu3 %v677_v19 }
 0x2cc   :  { %v1127_v32 = vunpack.i.h.bf16 %v1125_v9  ;;  %v1126_v11 = vunpack.i.l.bf16 %v1125_v9  ;;  %v607_v1 = vpop.permute.xlu0 %606 }
 0x2cd   :  { %v616_v62 = vsel %vm2162_vm6, %v607_v1, %v1096_v29  ;;  %v617_v48 = vsel %vm2163_vm5, %v1116_v6, %v607_v1  ;;  %vm2169_vm5 = vcmp.lt.s32.totalorder %v1338_v31, 112 }
 0x2ce   :  { %740 = vmatpush.bf16.msrb.mxu2 %v672_v40  ;;  %v632_v16 = vsel %vm2164_vm9, %v1091_v41, %v1126_v11  ;;  %v631_v18 = vsel %vm2155_vm0, %v1126_v11, %v1092_v28  ;;  %v600_v29 = vsel %vm2165_vm3, %v1112_v13, %v1127_v32  ;;  %v599_v41 = vsel %vm2166_vm10, %v1127_v32, %v1121_v63  ;;  %vm2170_vm9 = vmmov %vm2169_vm5 }
 0x2cf   :  { %753 = vmatpush.bf16.msrb.mxu3 %v673_v12  ;;  %v634_v46 = vsel %vm1537_vm13, %v1711_v55, %v632_v16  ;;  %v635_v45 = vsel %vm1555_vm15, %v1717_v10, %v631_v18  ;;  %v602_v28 = vsel %vm1537_vm13, %v1765_v21, %v600_v29  ;;  %v618_v43 = vsel %vm2152_vm7, %v1711_v55, %v617_v48  ;;  %vm2168_vm13 = vmmov %vm2151_vm1 }
 0x2d0   :  { %v678_v8 = vpack.c.bf16 %v634_v46, %v1711_v55  ;;  %v679_v56 = vpack.c.bf16 %v635_v45, %v1717_v10  ;;  %v603_v57 = vsel %vm1555_vm15, %v1789_v44, %v599_v41  ;;  %v619_v20 = vsel %vm2153_vm11, %v1717_v10, %v616_v62  ;;  %vm2171_vm0 = vmmov %vm2169_vm5 }
 0x2d1   :  { %968 = vmatmul.msk.bf16.vlgmr.msrb.gmra.mxu2 %vm691_vm8, %v690_v42  ;;  %v674_v53 = vpack.c.bf16 %v618_v43, %v602_v28  ;;  %v675_v15 = vpack.c.bf16 %v619_v20, %v603_v57  ;;  %vm2172_vm10 = vmmov %vm2165_vm3 }
 0x2d2   :  { %712 = vmatpush.bf16.msrb.mxu0 %v678_v8  ;;  %725 = vmatpush.bf16.msrb.mxu1 %v679_v56 }
 0x2d3   :  { %969 = vmatmul.msk.bf16.vlgmr.msrb.gmra.mxu3 %vm691_vm8, %v690_v42  ;;  %v575_v54 = vpop.permute.xlu1 %574 }
 0x2d4   :  { %v584_v47 = vsel %vm2167_vm12, %v575_v54, %v1117_v49  ;;  %v585_v55 = vsel %vm2168_vm13, %v1132_v36, %v575_v54  ;;  %vm2173_vm12 = vmmov %vm2171_vm0 }
 0x2d5   :  { %v586_v38 = vsel %vm2152_vm7, %v1765_v21, %v585_v55  ;;  %v587_v10 = vsel %vm2153_vm11, %v1789_v44, %v584_v47  ;;  %vm2174_vm13 = vmmov %vm2165_vm3 }
 0x2d6   :  { %713 = vmatpush.bf16.msrb.mxu0 %v674_v53  ;;  %726 = vmatpush.bf16.msrb.mxu1 %v675_v15  ;;  %v670_v23 = vpack.c.bf16 %v1765_v21, %v586_v38  ;;  %v671_v35 = vpack.c.bf16 %v1789_v44, %v587_v10 }
 0x2da   :  { %714 = vmatpush.bf16.msrb.mxu0 %v670_v23  ;;  %727 = vmatpush.bf16.msrb.mxu1 %v671_v35 }
 0x2dd   :  { %966 = vmatmul.msk.bf16.vlgmr.msrb.gmra.mxu0 %vm691_vm8, %v690_v42  ;;  %967 = vmatmul.msk.bf16.vlgmr.msrb.gmra.mxu1 %vm691_vm8, %v690_v42  ;;  %vm841_vm8 = vcmp.lt.s32.totalorder %v1338_v31, 111 }
 0x354   :  { %v742_v52 = vpop.f32.mrf.mxu2 }
 0x355   :  { %v767_v39 = vsub.f32 %v742_v52, %v763_v61  ;;  %v771_v24 = vsub.f32 0.0, %v742_v52 }
 0x356   :  { %v755_v59 = vpop.f32.mrf.mxu3 }
 0x357   :  { %v775_v36 = vsub.f32 %v771_v24, %v763_v61  ;;  %vm779_vm15 = vcmp.ge.f32.partialorder %v767_v39, 0.0  ;;  %v783_v50 = vmul.f32 0.001, %v767_v39  ;;  %v768_v58 = vsub.f32 %v755_v59, %v763_v61 }
 0x358   :  { %v772_v4 = vsub.f32 0.0, %v755_v59 }
 0x359   :  { %vm791_vm7 = vcmp.ge.f32.partialorder %v775_v36, 0.0  ;;  %v795_v21 = vmul.f32 0.01, %v775_v36  ;;  %v787_v7 = vsel %vm779_vm15, %v767_v39, %v783_v50  ;;  %v784_v22 = vmul.f32 0.001, %v768_v58  ;;  %vm2175_vm15 = vmmov %vm2165_vm3 }
 0x35a   :  { %v776_v44 = vsub.f32 %v772_v4, %v763_v61  ;;  %v716_v13 = vpop.f32.mrf.mxu0  ;;  %v729_v25 = vpop.f32.mrf.mxu1  ;;  %vm780_vm11 = vcmp.ge.f32.partialorder %v768_v58, 0.0 }
 0x35b   :  { %v799_v63 = vsel %vm791_vm7, %v775_v36, %v795_v21  ;;  %v765_v2 = vsub.f32 %v716_v13, %v763_v61  ;;  %v769_v49 = vsub.f32 0.0, %v716_v13  ;;  %v766_v3 = vsub.f32 %v729_v25, %v763_v61 }
 0x35c   :  { %v1977_v6 = vsub.f32 %v787_v7, %v799_v63  ;;  %vm792_vm4 = vcmp.ge.f32.partialorder %v776_v44, 0.0  ;;  %v796_v27 = vmul.f32 0.01, %v776_v44  ;;  %v744_v30 = vpop.f32.mrf.mxu2  ;;  %v770_v14 = vsub.f32 0.0, %v729_v25 }
 0x35d   :  { %v773_v37 = vsub.f32 %v769_v49, %v763_v61  ;;  %v781_v51 = vmul.f32 0.001, %v765_v2  ;;  %v788_v26 = vsel %vm780_vm11, %v768_v58, %v784_v22  ;;  %vm777_vm2 = vcmp.ge.f32.partialorder %v765_v2, 0.0 }
 0x35e   :  { %807 = vst [vmem:[#allocation8 + $0x10] sm:$0xff] %v1977_v6  ;;  %v800_v17 = vsel %vm792_vm4, %v776_v44, %v796_v27  ;;  %v757_v60 = vpop.f32.mrf.mxu3  ;;  %v774_v19 = vsub.f32 %v770_v14, %v763_v61  ;;  %v782_v0 = vmul.f32 0.001, %v766_v3  ;;  %vm778_vm1 = vcmp.ge.f32.partialorder %v766_v3, 0.0 }
 0x35f   :  { %v1980_v5 = vsub.f32 %v788_v26, %v800_v17  ;;  %vm789_vm14 = vcmp.ge.f32.partialorder %v773_v37, 0.0  ;;  %v793_v33 = vmul.f32 0.01, %v773_v37  ;;  %v785_v34 = vsel %vm777_vm2, %v765_v2, %v781_v51 }
 0x360   :  { %vm790_vm6 = vcmp.ge.f32.partialorder %v774_v19, 0.0  ;;  %v794_v11 = vmul.f32 0.01, %v774_v19  ;;  %v786_v62 = vsel %vm778_vm1, %v766_v3, %v782_v0 }
 0x361   :  { %808 = vst [vmem:[#allocation8 + $0x18] sm:$0xff] %v1980_v5  ;;  %v797_v9 = vsel %vm789_vm14, %v773_v37, %v793_v33 }
 0x362   :  { %v1983_v32 = vsub.f32 %v785_v34, %v797_v9  ;;  %v718_v1 = vpop.f32.mrf.mxu0  ;;  %v731_v40 = vpop.f32.mrf.mxu1  ;;  %v798_v12 = vsel %vm790_vm6, %v774_v19, %v794_v11 }
 0x363   :  { %v1988_v48 = vsub.f32 %v786_v62, %v798_v12 }
 0x364   :  { %805 = vst [vmem:[#allocation8] sm:$0xff] %v1983_v32  ;;  %809 = vrot.lane.b32.xlu0 %v1983_v32, %s1241_s0 }
 0x365   :  { %806 = vst [vmem:[#allocation8 + $0x8] sm:$0xff] %v1988_v48  ;;  %823 = vrot.lane.b32.xlu2 %v1988_v48, %s1243_s11  ;;  %811 = vrot.lane.b32.xlu1 %v1988_v48, %s1241_s0 }
 0x366   :  { %949 = dma.vmem_to_hbm [thread:$0]  %s945_s16, 512, %s947_s19, [#allocation9]  }
 0x36c   :  { %815 = vrot.lane.b32.xlu0 %v1980_v5, %s1241_s0 }
 0x36d   :  { %833 = vrot.lane.b32.xlu2 %v1983_v32, %s1245_s4  ;;  %821 = vrot.lane.b32.xlu1 %v1983_v32, %s1243_s11 }
 0x374   :  { %825 = vrot.lane.b32.xlu0 %v1977_v6, %s1243_s11 }
 0x375   :  { %813 = vrot.lane.b32.xlu2 %v1977_v6, %s1241_s0  ;;  %827 = vrot.lane.b32.xlu1 %v1980_v5, %s1243_s11 }
 0x37c   :  { %835 = vrot.lane.b32.xlu0 %v1988_v48, %s1245_s4 }
 0x37d   :  { %839 = vrot.lane.b32.xlu2 %v1980_v5, %s1245_s4  ;;  %837 = vrot.lane.b32.xlu1 %v1977_v6, %s1245_s4 }
 0x3bf   :  { %v824_v42 = vpop.permute.xlu2 %823 }
 0x3c7   :  { %v834_v16 = vpop.permute.xlu2 %833 }
 0x3cf   :  { %v814_v29 = vpop.permute.xlu2 %813 }
 0x3d6   :  { %v810_v18 = vpop.permute.xlu0 %809 }
 0x3d7   :  { %v812_v46 = vpop.permute.xlu1 %811  ;;  %v840_v41 = vpop.permute.xlu2 %839 }
 0x3d8   :  { %v845_v28 = vsel %vm841_vm8, %v840_v41, %v834_v16  ;;  %v2020_v54 = vsel %vm2170_vm9, %v810_v18, %v812_v46  ;;  %v2026_v38 = vsel %vm2171_vm0, %v812_v46, %v814_v29 }
 0x3d9   :  { %v909_v20 = vadd.f32 %v845_v28, %v1980_v5  ;;  %v846_v24 = vadd.f32 %v2020_v54, %v1983_v32  ;;  %v847_v7 = vadd.f32 %v2026_v38, %v1988_v48 }
 0x3de   :  { %v816_v45 = vpop.permute.xlu0 %815 }
 0x3df   :  { %v822_v8 = vpop.permute.xlu1 %821  ;;  %v820_v56 = vsel %vm2169_vm5, %v816_v45, %v810_v18  ;;  %v817_v59 = vsel %vm2173_vm12, %v814_v29, %v816_v45 }
 0x3e0   :  { %v889_v43 = vadd.f32 %v845_v28, %v820_v56  ;;  %v849_v47 = vadd.f32 %v820_v56, %v1980_v5  ;;  %v913_v55 = vsub.f32 %v909_v20, %v820_v56  ;;  %v2030_v10 = vsel %vm2165_vm3, %v822_v8, %v824_v42 }
 0x3e1   :  { %v850_v44 = vadd.f32 %v846_v24, %v2030_v10  ;;  %v848_v25 = vadd.f32 %v817_v59, %v1977_v6 }
 0x3e2   :  { %v893_v15 = vsub.f32 %v889_v43, %v1980_v5 }
 0x3e6   :  { %v826_v57 = vpop.permute.xlu0 %825 }
 0x3e7   :  { %v828_v53 = vpop.permute.xlu1 %827  ;;  %v2040_v36 = vsel %vm2174_vm13, %v824_v42, %v826_v57 }
 0x3e8   :  { %v832_v23 = vsel %vm2172_vm10, %v828_v53, %v822_v8  ;;  %v829_v22 = vsel %vm2175_vm15, %v826_v57, %v828_v53  ;;  %v851_v27 = vadd.f32 %v847_v7, %v2040_v36 }
 0x3e9   :  { %v853_v35 = vadd.f32 %v849_v47, %v832_v23  ;;  %v869_v61 = vadd.f32 %v845_v28, %v832_v23  ;;  %v897_v52 = vsub.f32 %v893_v15, %v832_v23  ;;  %v917_v39 = vsub.f32 %v913_v55, %v832_v23 }
 0x3ea   :  { %v852_v51 = vadd.f32 %v848_v25, %v829_v22 }
 0x3eb   :  { %v857_v50 = vadd.f32 %v853_v35, %v845_v28  ;;  %v873_v58 = vsub.f32 %v869_v61, %v1980_v5  ;;  %v901_v4 = vmul.f32 0.5, %v897_v52  ;;  %v921_v21 = vmul.f32 0.5, %v917_v39 }
 0x3ed   :  { %v861_v63 = vmul.f32 0.5, %v857_v50  ;;  %v877_v2 = vsub.f32 %v873_v58, %v820_v56  ;;  %905 = vst [vmem:[#allocation7 + $0x58] sm:$0xff] %v901_v4 }
 0x3ee   :  { %v836_v13 = vpop.permute.xlu0 %835  ;;  %925 = vst [vmem:[#allocation7 + $0x78] sm:$0xff] %v921_v21 }
 0x3ef   :  { %v844_v49 = vsel %vm841_vm8, %v834_v16, %v836_v13  ;;  %865 = vst [vmem:[#allocation7 + $0x18] sm:$0xff] %v861_v63  ;;  %v881_v37 = vmul.f32 0.5, %v877_v2  ;;  %v838_v14 = vpop.permute.xlu1 %837 }
 0x3f0   :  { %v854_v3 = vadd.f32 %v850_v44, %v844_v49  ;;  %v866_v30 = vadd.f32 %v844_v49, %v2030_v10  ;;  %v886_v26 = vadd.f32 %v844_v49, %v2020_v54  ;;  %v906_v17 = vadd.f32 %v844_v49, %v1983_v32 }
 0x3f1   :  { %v842_v60 = vsel %vm841_vm8, %v838_v14, %v840_v41  ;;  %v843_v5 = vsel %vm841_vm8, %v836_v13, %v838_v14  ;;  %885 = vst [vmem:[#allocation7 + $0x38] sm:$0xff] %v881_v37 }
 0x3f2   :  { %v858_v33 = vmul.f32 0.5, %v854_v3  ;;  %v870_v19 = vsub.f32 %v866_v30, %v1983_v32  ;;  %v856_v0 = vadd.f32 %v852_v51, %v842_v60  ;;  %v868_v34 = vadd.f32 %v842_v60, %v829_v22 }
 0x3f3   :  { %v888_v9 = vadd.f32 %v842_v60, %v817_v59  ;;  %v908_v11 = vadd.f32 %v842_v60, %v1977_v6  ;;  %v855_v1 = vadd.f32 %v851_v27, %v843_v5  ;;  %v867_v40 = vadd.f32 %v843_v5, %v2040_v36 }
 0x3f4   :  { %862 = vst [vmem:[#allocation7] sm:$0xff] %v858_v33  ;;  %v874_v62 = vsub.f32 %v870_v19, %v2020_v54  ;;  %v887_v12 = vadd.f32 %v843_v5, %v2026_v38  ;;  %v860_v42 = vmul.f32 0.5, %v856_v0  ;;  %v872_v31 = vsub.f32 %v868_v34, %v1977_v6 }
 0x3f5   :  { %v892_v16 = vsub.f32 %v888_v9, %v1977_v6  ;;  %v912_v18 = vsub.f32 %v908_v11, %v817_v59  ;;  %v859_v29 = vmul.f32 0.5, %v855_v1  ;;  %v871_v46 = vsub.f32 %v867_v40, %v1988_v48 }
 0x3f6   :  { %v878_v45 = vmul.f32 0.5, %v874_v62  ;;  %v890_v41 = vsub.f32 %v886_v26, %v1983_v32  ;;  %864 = vst [vmem:[#allocation7 + $0x10] sm:$0xff] %v860_v42  ;;  %v876_v8 = vsub.f32 %v872_v31, %v817_v59  ;;  %v891_v43 = vsub.f32 %v887_v12, %v1988_v48 }
 0x3f7   :  { %v896_v56 = vsub.f32 %v892_v16, %v829_v22  ;;  %v916_v28 = vsub.f32 %v912_v18, %v829_v22  ;;  %863 = vst [vmem:[#allocation7 + $0x8] sm:$0xff] %v859_v29  ;;  %v875_v57 = vsub.f32 %v871_v46, %v2026_v38  ;;  %v907_v6 = vadd.f32 %v843_v5, %v1988_v48 }
 0x3f8   :  { %v894_v20 = vsub.f32 %v890_v41, %v2030_v10  ;;  %v910_v47 = vsub.f32 %v906_v17, %v2020_v54  ;;  %v880_v55 = vmul.f32 0.5, %v876_v8  ;;  %882 = vst [vmem:[#allocation7 + $0x20] sm:$0xff] %v878_v45  ;;  %v895_v32 = vsub.f32 %v891_v43, %v2040_v36 }
 0x3f9   :  { %v900_v53 = vmul.f32 0.5, %v896_v56  ;;  %v920_v15 = vmul.f32 0.5, %v916_v28  ;;  %v879_v23 = vmul.f32 0.5, %v875_v57  ;;  %v911_v35 = vsub.f32 %v907_v6, %v2026_v38 }
 0x3fa   :  { %v914_v61 = vsub.f32 %v910_v47, %v2030_v10  ;;  %884 = vst [vmem:[#allocation7 + $0x30] sm:$0xff] %v880_v55  ;;  %v898_v52 = vmul.f32 0.5, %v894_v20  ;;  %v899_v39 = vmul.f32 0.5, %v895_v32 }
 0x3fb   :  { %904 = vst [vmem:[#allocation7 + $0x50] sm:$0xff] %v900_v53  ;;  %v915_v24 = vsub.f32 %v911_v35, %v2040_v36 }
 0x3fc   :  { %924 = vst [vmem:[#allocation7 + $0x70] sm:$0xff] %v920_v15  ;;  %v918_v48 = vmul.f32 0.5, %v914_v61 }
 0x3fd   :  { %883 = vst [vmem:[#allocation7 + $0x28] sm:$0xff] %v879_v23  ;;  %v919_v54 = vmul.f32 0.5, %v915_v24 }
 0x3fe   :  { %902 = vst [vmem:[#allocation7 + $0x40] sm:$0xff] %v898_v52 }
 0x3ff   :  { %903 = vst [vmem:[#allocation7 + $0x48] sm:$0xff] %v899_v39 }
 0x400   :  { %922 = vst [vmem:[#allocation7 + $0x60] sm:$0xff] %v918_v48 }
 0x401   :  { %923 = vst [vmem:[#allocation7 + $0x68] sm:$0xff] %v919_v54 }
 0x402   :  { %938 = dma.vmem_to_hbm [thread:$0]  %s931_s20, 2048, %s933_s23, [#allocation4], %s1248_s24, %s1248_s24, %s1249_s25  }
 0x403   :  { %1234 = dma.done.wait [#allocation4], 2048  }
 0x404   :  { %1235 = vsyncadd [#allocation4], 4294965248 }
 0x405   :  { %1236 = dma.done.wait [#allocation9], 512  }
 0x406   :  { %1237 = vsyncadd [#allocation9], 4294966784 }
 0x407   :  { %958 = vsyncpa [#allocation3], 1 }
 0x408   :  { %959 = vsyncpa [#allocation6], 1 }
 0x409   :  { %960 = vsyncpa [#allocation4], 1 }
 0x40a   :  { %961 = vsyncpa [#allocation9], 1 }

</bundles_post_ra>
